<compile_context>
chip_gen: v7x
topology: tpu7x:2x2x1
jax: 0.10.0
libtpu: 0.0.40
codegen_flags: <defaults>
</compile_context>

<pallas_src>
import jax
import jax.numpy as jnp
from jax import lax
from jax.experimental import pallas as pl
from jax.experimental.pallas import tpu as pltpu


# ---------------------------------------------------------------------------
# Static geometry (20x20 input -> two MaxPool2d(2) -> 5x5, matching fc1=16*5*5)
# ---------------------------------------------------------------------------
H1 = W1 = 20
H2 = W2 = 10
H3 = W3 = 5

WP1, WP2, WP3 = W1 + 2, W2 + 2, W3 + 2              # padded widths: 22, 12, 7
S1 = (H1 + 2) * WP1                                  # 484 (padded image size)
S2 = (H2 + 2) * WP2                                  # 144
S3 = (H3 + 2) * WP3                                  # 49
MG1, MG2, MG3 = WP1 + 1, WP2 + 1, WP3 + 1            # lane margins: 23, 13, 8

CIN_PAD = 8                                          # conv1 Cin padded 3 -> 8
C1_OUT, C2_OUT, C3_OUT = 16, 32, 16
FC_OUT = 65
FC_LANE = 128                                        # per-channel fc block width


# ---------------------------------------------------------------------------
# Kernel helpers (run per image / per grid step)
# ---------------------------------------------------------------------------
def _conv_relu(a, w_ref, b_ref, wp, mg, length):
    """3x3 conv (zero padding baked into `a`'s flat layout) + bias + ReLU.

    a:     (Cin, mg + length + mg) f32, zero margins / zero padded border.
    w_ref: (Cout, 9*Cin) bf16, contraction index = (kh*3+kw)*Cin + cin.
    Returns (Cout, length) f32; only interior positions are meaningful.
    """
    taps = []
    for kh in range(3):
        for kw in range(3):
            off = (kh - 1) * wp + (kw - 1)
            taps.append(a[:, mg + off: mg + off + length])      # (Cin, L)
    stacked = jnp.concatenate(taps, axis=0).astype(jnp.bfloat16)  # (9*Cin, L)
    y = jnp.dot(w_ref[...], stacked,
                preferred_element_type=jnp.float32)              # (Cout, L)
    return jnp.maximum(y + b_ref[...], 0.0)


def _pool_gather(y, wp, length, g_ref):
    """2x2 / stride-2 maxpool + relayout into the next stage's padded,
    margined flat layout via one per-image 0/1 selection matmul (bf16)."""
    m = length - (wp + 1)
    mx = jnp.maximum(jnp.maximum(y[:, 0:m], y[:, 1:m + 1]),
                     jnp.maximum(y[:, wp:wp + m], y[:, wp + 1:wp + 1 + m]))
    return jnp.dot(mx.astype(jnp.bfloat16), g_ref[...],
                   preferred_element_type=jnp.float32)


def _net_kernel(x_ref, w1_ref, b1_ref, w2_ref, b2_ref, w3_ref, b3_ref,
                g1_ref, g2_ref, wfc_ref, mfc_ref, bfc_ref, o_ref):
    a1 = x_ref[0]                                        # (8, 530) f32
    y1 = _conv_relu(a1, w1_ref, b1_ref, WP1, MG1, S1)    # (16, 484)
    a2 = _pool_gather(y1, WP1, S1, g1_ref)               # (16, 170)
    y2 = _conv_relu(a2, w2_ref, b2_ref, WP2, MG2, S2)    # (32, 144)
    a3 = _pool_gather(y2, WP2, S2, g2_ref)               # (32, 65)
    y3 = _conv_relu(a3, w3_ref, b3_ref, WP3, MG3, S3)    # (16, 49)

    # Folded fc1..fc4 (single affine 400 -> 65), one MXU dot:
    #   P[c, 128*c' + j] = sum_p y3[c, p] * wfc[p, 128*c' + j]
    # the diagonal blocks (c == c') are selected with a 0/1 mask, reduced over
    # sublanes, and the 16 lane-aligned 128-wide blocks are summed.
    p = jnp.dot(y3.astype(jnp.bfloat16), wfc_ref[...],
                preferred_element_type=jnp.float32)       # (16, 16*128)
    p = p * mfc_ref[...]
    colsum = jnp.sum(p, axis=0, keepdims=True)            # (1, 16*128)
    out = bfc_ref[...]                                     # (1, 128)
    for c in range(C3_OUT):
        out = out + colsum[:, c * FC_LANE:(c + 1) * FC_LANE]
    o_ref[0] = out                                         # unmasked (1,128) store


# ---------------------------------------------------------------------------
# Wrapper
# ---------------------------------------------------------------------------
def _const_spec(a):
    ndim = a.ndim
    return pl.BlockSpec(a.shape, lambda b, _nd=ndim: (0,) * _nd)


def fused_forward(prepped, x):
    n = x.shape[0]
    # Per-forward glue (tiny): channel pad 3->8, spatial zero-pad, flatten,
    # add lane margins so every conv tap is a static in-bounds slice.
    xp = jnp.pad(x, ((0, 0), (0, CIN_PAD - 3), (1, 1), (1, 1)))   # (n,8,22,22)
    xf = xp.reshape(n, CIN_PAD, S1)
    xm = jnp.pad(xf, ((0, 0), (0, 0), (MG1, MG1)))                # (n,8,530)

    weights = [prepped[k] for k in
               ("conv1_w", "conv1_b", "conv2_w", "conv2_b", "conv3_w",
                "conv3_b", "pool1_g", "pool2_g", "fc_w", "fc_mask", "fc_b")]

    in_specs = [pl.BlockSpec((1, CIN_PAD, S1 + 2 * MG1), lambda b: (b, 0, 0))]
    in_specs += [_const_spec(a) for a in weights]

    macs_per_img = (C1_OUT * 9 * CIN_PAD * S1 +
                    C1_OUT * (S1 - WP1 - 1) * (S2 + 2 * MG2) +
                    C2_OUT * 9 * C1_OUT * S2 +
                    C2_OUT * (S2 - WP2 - 1) * (S3 + 2 * MG3) +
                    C3_OUT * 9 * C2_OUT * S3 +
                    C3_OUT * S3 * C3_OUT * FC_LANE)
    wbytes = sum(int(a.size) * a.dtype.itemsize for a in weights)
    cost = pl.CostEstimate(flops=2 * macs_per_img * n, transcendentals=0,
                           bytes_accessed=int(xm.size) * 4 + wbytes
                           + n * FC_LANE * 4)

    out3 = pl.pallas_call(
        _net_kernel,
        out_shape=jax.ShapeDtypeStruct((n, 1, FC_LANE), jnp.float32),
        grid=(n,),
        in_specs=in_specs,
        out_specs=pl.BlockSpec((1, 1, FC_LANE), lambda b: (b, 0, 0)),
        compiler_params=pltpu.CompilerParams(
            dimension_semantics=("parallel",),
            vmem_limit_bytes=32 * 1024 * 1024),
        cost_estimate=cost,
    )(xm, *weights)
    return out3.reshape(n, FC_LANE)[:, :FC_OUT]


# ---------------------------------------------------------------------------
# One-time parameter preparation (outside the hot path, batch-independent)
# ---------------------------------------------------------------------------
def _conv_taps_stacked(w, cin_pad=None):
    # (Cout, Cin, 3, 3) -> (Cout, 9*Cin[_pad]); index = (kh*3+kw)*Cin + cin.
    cout, cin = w.shape[0], w.shape[1]
    if cin_pad is not None and cin_pad > cin:
        w = jnp.pad(w, ((0, 0), (0, cin_pad - cin), (0, 0), (0, 0)))
    return jnp.transpose(w, (0, 2, 3, 1)).reshape(cout, -1).astype(jnp.bfloat16)


def _pool_gather_matrix(h_out, w_out, wp_src, wp_dst, s_dst, mg_dst, m_len):
    """Per-image 0/1 matrix (m_len, mg + s_dst + mg): picks the top-left corner
    of each 2x2 window from the max-reduced source and drops it at the
    padded/margined flat position the next conv stage expects (zeros elsewhere
    supply the next layer's zero padding)."""
    hh, ww = jnp.meshgrid(jnp.arange(h_out), jnp.arange(w_out), indexing="ij")
    src = (2 * hh + 1) * wp_src + (2 * ww + 1)
    dst = mg_dst + (hh + 1) * wp_dst + (ww + 1)
    g = jnp.zeros((m_len, 2 * mg_dst + s_dst), jnp.float32)
    g = g.at[src.ravel(), dst.ravel()].set(1.0)
    return g.astype(jnp.bfloat16)                  # 0/1 exact in bf16


def prep_params(params):
    p = {
        "conv1_w": _conv_taps_stacked(params["conv1_w"], cin_pad=CIN_PAD),
        "conv1_b": params["conv1_b"].reshape(C1_OUT, 1).astype(jnp.float32),
        "conv2_w": _conv_taps_stacked(params["conv2_w"]),
        "conv2_b": params["conv2_b"].reshape(C2_OUT, 1).astype(jnp.float32),
        "conv3_w": _conv_taps_stacked(params["conv3_w"]),
        "conv3_b": params["conv3_b"].reshape(C3_OUT, 1).astype(jnp.float32),
        "pool1_g": _pool_gather_matrix(H2, W2, WP1, WP2, S2, MG2,
                                       S1 - (WP1 + 1)),
        "pool2_g": _pool_gather_matrix(H3, W3, WP2, WP3, S3, MG3,
                                       S2 - (WP2 + 1)),
    }
    # fc1..fc4 have no nonlinearity between them -> fold into a single affine.
    w_fold = (params["fc1_w"].T @ params["fc2_w"].T
              @ params["fc3_w"].T @ params["fc4_w"].T)             # (400, 65)
    b_fold = (((params["fc1_b"] @ params["fc2_w"].T + params["fc2_b"])
               @ params["fc3_w"].T + params["fc3_b"])
              @ params["fc4_w"].T + params["fc4_b"])               # (65,)
    # Re-index the 400 inputs (NCHW flatten: c*25 + h*5 + w) into conv3's
    # padded flat layout p = (h+1)*7 + (w+1), one (49, 65) block per channel,
    # laid out at lane-aligned 128-wide blocks (zeros in lanes 65..127).
    w4 = w_fold.reshape(C3_OUT, H3, W3, FC_OUT)
    wpad = jnp.zeros((C3_OUT, H3 + 2, W3 + 2, FC_OUT), jnp.float32)
    wpad = wpad.at[:, 1:1 + H3, 1:1 + W3, :].set(w4).reshape(C3_OUT, S3, FC_OUT)
    wbig = jnp.zeros((S3, C3_OUT * FC_LANE), jnp.float32)
    mask = jnp.zeros((C3_OUT, C3_OUT * FC_LANE), jnp.float32)
    for c in range(C3_OUT):
        wbig = wbig.at[:, c * FC_LANE:c * FC_LANE + FC_OUT].set(wpad[c])
        mask = mask.at[c, c * FC_LANE:(c + 1) * FC_LANE].set(1.0)
    p["fc_w"] = wbig.astype(jnp.bfloat16)
    p["fc_mask"] = mask
    p["fc_b"] = jnp.zeros((1, FC_LANE), jnp.float32).at[0, :FC_OUT].set(b_fold)
    return p


# ---------------------------------------------------------------------------
# Synthetic parameters + pure-JAX reference (for a correctness check)
# ---------------------------------------------------------------------------
def init_params(key):
    ks = jax.random.split(key, 14)

    def norm(k, shape, scale=0.05):
        return (scale * jax.random.normal(k, shape)).astype(jnp.float32)

    return {
        "conv1_w": norm(ks[0], (16, 3, 3, 3)),   "conv1_b": norm(ks[1], (16,)),
        "conv2_w": norm(ks[2], (32, 16, 3, 3)),  "conv2_b": norm(ks[3], (32,)),
        "conv3_w": norm(ks[4], (16, 32, 3, 3)),  "conv3_b": norm(ks[5], (16,)),
        "fc1_w": norm(ks[6], (300, 400)),        "fc1_b": norm(ks[7], (300,)),
        "fc2_w": norm(ks[8], (150, 300)),        "fc2_b": norm(ks[9], (150,)),
        "fc3_w": norm(ks[10], (130, 150)),       "fc3_b": norm(ks[11], (130,)),
        "fc4_w": norm(ks[12], (65, 130)),        "fc4_b": norm(ks[13], (65,)),
    }


def reference_forward(params, x):
    dn = ("NCHW", "OIHW", "NCHW")

    def conv_relu(v, w, b):
        v = lax.conv_general_dilated(v, w, (1, 1), ((1, 1), (1, 1)),
                                     dimension_numbers=dn)
        return jax.nn.relu(v + b[None, :, None, None])

    def pool(v):
        return lax.reduce_window(v, -jnp.inf, lax.max,
                                 (1, 1, 2, 2), (1, 1, 2, 2), "VALID")

    v = pool(conv_relu(x, params["conv1_w"], params["conv1_b"]))
    v = pool(conv_relu(v, params["conv2_w"], params["conv2_b"]))
    v = conv_relu(v, params["conv3_w"], params["conv3_b"])
    v = v.reshape(v.shape[0], -1)                       # NCHW flatten, (N, 400)
    v = v @ params["fc1_w"].T + params["fc1_b"]
    v = v @ params["fc2_w"].T + params["fc2_b"]
    v = v @ params["fc3_w"].T + params["fc3_b"]
    v = v @ params["fc4_w"].T + params["fc4_b"]
    return v


if __name__ == "__main__":
    key = jax.random.PRNGKey(0)
    pkey, xkey = jax.random.split(key)
    params = init_params(pkey)
    # 20x20 input -> two MaxPool2d(2) -> 5x5, matching fc1's 16*5*5.
    x = jax.random.normal(xkey, (2, 3, H1, W1), dtype=jnp.float32)

    prepped = prep_params(params)
    fused = jax.jit(lambda xx: fused_forward(prepped, xx))
    out = jax.block_until_ready(fused(x))

    assert out.shape == (2, FC_OUT), out.shape
    assert bool(jnp.all(jnp.isfinite(out)))

    ref = jax.block_until_ready(jax.jit(reference_forward)(params, x))
    max_err = float(jnp.max(jnp.abs(out - ref)))
    # bf16 matmul operands + folded fc change rounding vs the f32 reference.
    assert jnp.allclose(out, ref, rtol=5e-2, atol=2e-2), f"max abs err {max_err}"

    print("KERNEL_OK")
</pallas_src>

<mosaic_0001>
module attributes {stable_mosaic.version = 11 : i64} {
  func.func @_net_kernel(%arg0: i32, %arg1: memref<1x8x530xf32, #tpu.memory_space<vmem>>, %arg2: memref<16x72xbf16, #tpu.memory_space<vmem>>, %arg3: memref<16x1xf32, #tpu.memory_space<vmem>>, %arg4: memref<32x144xbf16, #tpu.memory_space<vmem>>, %arg5: memref<32x1xf32, #tpu.memory_space<vmem>>, %arg6: memref<16x288xbf16, #tpu.memory_space<vmem>>, %arg7: memref<16x1xf32, #tpu.memory_space<vmem>>, %arg8: memref<461x170xbf16, #tpu.memory_space<vmem>>, %arg9: memref<131x65xbf16, #tpu.memory_space<vmem>>, %arg10: memref<49x2048xbf16, #tpu.memory_space<vmem>>, %arg11: memref<16x2048xf32, #tpu.memory_space<vmem>>, %arg12: memref<1x128xf32, #tpu.memory_space<vmem>>, %arg13: memref<1x1x128xf32, #tpu.memory_space<vmem>>) attributes {dimension_semantics = [#tpu.dimension_semantics<parallel>], iteration_bounds = array<i64: 2>, scalar_prefetch = 0 : i64, scratch_operands = 0 : i64, tpu.core_type = #tpu.core_type<tc>, window_params = [{transform_indices = @transform_0, window_bounds = array<i64: 1, 8, 530>}, {pipeline_mode = #tpu.pipeline_mode<synchronous>, transform_indices = @transform_1, window_bounds = array<i64: 16, 72>}, {pipeline_mode = #tpu.pipeline_mode<synchronous>, transform_indices = @transform_2, window_bounds = array<i64: 16, 1>}, {pipeline_mode = #tpu.pipeline_mode<synchronous>, transform_indices = @transform_3, window_bounds = array<i64: 32, 144>}, {pipeline_mode = #tpu.pipeline_mode<synchronous>, transform_indices = @transform_4, window_bounds = array<i64: 32, 1>}, {pipeline_mode = #tpu.pipeline_mode<synchronous>, transform_indices = @transform_5, window_bounds = array<i64: 16, 288>}, {pipeline_mode = #tpu.pipeline_mode<synchronous>, transform_indices = @transform_6, window_bounds = array<i64: 16, 1>}, {pipeline_mode = #tpu.pipeline_mode<synchronous>, transform_indices = @transform_7, window_bounds = array<i64: 461, 170>}, {pipeline_mode = #tpu.pipeline_mode<synchronous>, transform_indices = @transform_8, window_bounds = array<i64: 131, 65>}, {pipeline_mode = #tpu.pipeline_mode<synchronous>, transform_indices = @transform_9, window_bounds = array<i64: 49, 2048>}, {pipeline_mode = #tpu.pipeline_mode<synchronous>, transform_indices = @transform_10, window_bounds = array<i64: 16, 2048>}, {pipeline_mode = #tpu.pipeline_mode<synchronous>, transform_indices = @transform_11, window_bounds = array<i64: 1, 128>}, {transform_indices = @transform_12, window_bounds = array<i64: 1, 1, 128>}]} {
    %c0 = arith.constant 0 : index
    %c0_0 = arith.constant 0 : index
    %c0_1 = arith.constant 0 : index
    %0 = vector.load %arg1[%c0, %c0_0, %c0_1] : memref<1x8x530xf32, #tpu.memory_space<vmem>>, vector<1x8x530xf32>
    %1 = vector.shape_cast %0 : vector<1x8x530xf32> to vector<8x530xf32>
    %2 = vector.extract_strided_slice %1 {offsets = [0, 0], sizes = [8, 484], strides = [1, 1]} : vector<8x530xf32> to vector<8x484xf32>
    %3 = vector.extract_strided_slice %1 {offsets = [0, 1], sizes = [8, 484], strides = [1, 1]} : vector<8x530xf32> to vector<8x484xf32>
    %4 = vector.extract_strided_slice %1 {offsets = [0, 2], sizes = [8, 484], strides = [1, 1]} : vector<8x530xf32> to vector<8x484xf32>
    %5 = vector.extract_strided_slice %1 {offsets = [0, 22], sizes = [8, 484], strides = [1, 1]} : vector<8x530xf32> to vector<8x484xf32>
    %6 = vector.extract_strided_slice %1 {offsets = [0, 23], sizes = [8, 484], strides = [1, 1]} : vector<8x530xf32> to vector<8x484xf32>
    %7 = vector.extract_strided_slice %1 {offsets = [0, 24], sizes = [8, 484], strides = [1, 1]} : vector<8x530xf32> to vector<8x484xf32>
    %8 = vector.extract_strided_slice %1 {offsets = [0, 44], sizes = [8, 484], strides = [1, 1]} : vector<8x530xf32> to vector<8x484xf32>
    %9 = vector.extract_strided_slice %1 {offsets = [0, 45], sizes = [8, 484], strides = [1, 1]} : vector<8x530xf32> to vector<8x484xf32>
    %10 = vector.extract_strided_slice %1 {offsets = [0, 46], sizes = [8, 484], strides = [1, 1]} : vector<8x530xf32> to vector<8x484xf32>
    %11 = tpu.concatenate %2, %3, %4, %5, %6, %7, %8, %9, %10 in 0 : vector<8x484xf32>, vector<8x484xf32>, vector<8x484xf32>, vector<8x484xf32>, vector<8x484xf32>, vector<8x484xf32>, vector<8x484xf32>, vector<8x484xf32>, vector<8x484xf32> -> vector<72x484xf32>
    %12 = arith.truncf %11 : vector<72x484xf32> to vector<72x484xbf16>
    %c0_2 = arith.constant 0 : index
    %c0_3 = arith.constant 0 : index
    %13 = vector.load %arg2[%c0_2, %c0_3] : memref<16x72xbf16, #tpu.memory_space<vmem>>, vector<16x72xbf16>
    %cst = arith.constant dense<0.000000e+00> : vector<16x484xf32>
    %14 = tpu.matmul %13, %12, %cst {dimension_numbers = #tpu.dot_dimension_numbers<[1], [0], [0], [1], [0, 0, 1, 1], [], []>} : vector<16x72xbf16>, vector<72x484xbf16>, vector<16x484xf32> -> vector<16x484xf32>
    %c0_4 = arith.constant 0 : index
    %c0_5 = arith.constant 0 : index
    %15 = vector.load %arg3[%c0_4, %c0_5] : memref<16x1xf32, #tpu.memory_space<vmem>>, vector<16x1xf32>
    %16 = vector.broadcast %15 : vector<16x1xf32> to vector<16x484xf32>
    %17 = arith.addf %14, %16 : vector<16x484xf32>
    %cst_6 = arith.constant 0.000000e+00 : f32
    %18 = vector.broadcast %cst_6 : f32 to vector<16x484xf32>
    %19 = arith.maximumf %17, %18 : vector<16x484xf32>
    %20 = vector.extract_strided_slice %19 {offsets = [0, 0], sizes = [16, 461], strides = [1, 1]} : vector<16x484xf32> to vector<16x461xf32>
    %21 = vector.extract_strided_slice %19 {offsets = [0, 1], sizes = [16, 461], strides = [1, 1]} : vector<16x484xf32> to vector<16x461xf32>
    %22 = arith.maximumf %20, %21 : vector<16x461xf32>
    %23 = vector.extract_strided_slice %19 {offsets = [0, 22], sizes = [16, 461], strides = [1, 1]} : vector<16x484xf32> to vector<16x461xf32>
    %24 = vector.extract_strided_slice %19 {offsets = [0, 23], sizes = [16, 461], strides = [1, 1]} : vector<16x484xf32> to vector<16x461xf32>
    %25 = arith.maximumf %23, %24 : vector<16x461xf32>
    %26 = arith.maximumf %22, %25 : vector<16x461xf32>
    %27 = arith.truncf %26 : vector<16x461xf32> to vector<16x461xbf16>
    %c0_7 = arith.constant 0 : index
    %c0_8 = arith.constant 0 : index
    %28 = vector.load %arg8[%c0_7, %c0_8] : memref<461x170xbf16, #tpu.memory_space<vmem>>, vector<461x170xbf16>
    %cst_9 = arith.constant dense<0.000000e+00> : vector<16x170xf32>
    %29 = tpu.matmul %27, %28, %cst_9 {dimension_numbers = #tpu.dot_dimension_numbers<[1], [0], [0], [1], [0, 0, 1, 1], [], []>} : vector<16x461xbf16>, vector<461x170xbf16>, vector<16x170xf32> -> vector<16x170xf32>
    %30 = vector.extract_strided_slice %29 {offsets = [0, 0], sizes = [16, 144], strides = [1, 1]} : vector<16x170xf32> to vector<16x144xf32>
    %31 = vector.extract_strided_slice %29 {offsets = [0, 1], sizes = [16, 144], strides = [1, 1]} : vector<16x170xf32> to vector<16x144xf32>
    %32 = vector.extract_strided_slice %29 {offsets = [0, 2], sizes = [16, 144], strides = [1, 1]} : vector<16x170xf32> to vector<16x144xf32>
    %33 = vector.extract_strided_slice %29 {offsets = [0, 12], sizes = [16, 144], strides = [1, 1]} : vector<16x170xf32> to vector<16x144xf32>
    %34 = vector.extract_strided_slice %29 {offsets = [0, 13], sizes = [16, 144], strides = [1, 1]} : vector<16x170xf32> to vector<16x144xf32>
    %35 = vector.extract_strided_slice %29 {offsets = [0, 14], sizes = [16, 144], strides = [1, 1]} : vector<16x170xf32> to vector<16x144xf32>
    %36 = vector.extract_strided_slice %29 {offsets = [0, 24], sizes = [16, 144], strides = [1, 1]} : vector<16x170xf32> to vector<16x144xf32>
    %37 = vector.extract_strided_slice %29 {offsets = [0, 25], sizes = [16, 144], strides = [1, 1]} : vector<16x170xf32> to vector<16x144xf32>
    %38 = vector.extract_strided_slice %29 {offsets = [0, 26], sizes = [16, 144], strides = [1, 1]} : vector<16x170xf32> to vector<16x144xf32>
    %39 = tpu.concatenate %30, %31, %32, %33, %34, %35, %36, %37, %38 in 0 : vector<16x144xf32>, vector<16x144xf32>, vector<16x144xf32>, vector<16x144xf32>, vector<16x144xf32>, vector<16x144xf32>, vector<16x144xf32>, vector<16x144xf32>, vector<16x144xf32> -> vector<144x144xf32>
    %40 = arith.truncf %39 : vector<144x144xf32> to vector<144x144xbf16>
    %c0_10 = arith.constant 0 : index
    %c0_11 = arith.constant 0 : index
    %41 = vector.load %arg4[%c0_10, %c0_11] : memref<32x144xbf16, #tpu.memory_space<vmem>>, vector<32x144xbf16>
    %cst_12 = arith.constant dense<0.000000e+00> : vector<32x144xf32>
    %42 = tpu.matmul %41, %40, %cst_12 {dimension_numbers = #tpu.dot_dimension_numbers<[1], [0], [0], [1], [0, 0, 1, 1], [], []>} : vector<32x144xbf16>, vector<144x144xbf16>, vector<32x144xf32> -> vector<32x144xf32>
    %c0_13 = arith.constant 0 : index
    %c0_14 = arith.constant 0 : index
    %43 = vector.load %arg5[%c0_13, %c0_14] : memref<32x1xf32, #tpu.memory_space<vmem>>, vector<32x1xf32>
    %44 = vector.broadcast %43 : vector<32x1xf32> to vector<32x144xf32>
    %45 = arith.addf %42, %44 : vector<32x144xf32>
    %cst_15 = arith.constant 0.000000e+00 : f32
    %46 = vector.broadcast %cst_15 : f32 to vector<32x144xf32>
    %47 = arith.maximumf %45, %46 : vector<32x144xf32>
    %48 = vector.extract_strided_slice %47 {offsets = [0, 0], sizes = [32, 131], strides = [1, 1]} : vector<32x144xf32> to vector<32x131xf32>
    %49 = vector.extract_strided_slice %47 {offsets = [0, 1], sizes = [32, 131], strides = [1, 1]} : vector<32x144xf32> to vector<32x131xf32>
    %50 = arith.maximumf %48, %49 : vector<32x131xf32>
    %51 = vector.extract_strided_slice %47 {offsets = [0, 12], sizes = [32, 131], strides = [1, 1]} : vector<32x144xf32> to vector<32x131xf32>
    %52 = vector.extract_strided_slice %47 {offsets = [0, 13], sizes = [32, 131], strides = [1, 1]} : vector<32x144xf32> to vector<32x131xf32>
    %53 = arith.maximumf %51, %52 : vector<32x131xf32>
    %54 = arith.maximumf %50, %53 : vector<32x131xf32>
    %55 = arith.truncf %54 : vector<32x131xf32> to vector<32x131xbf16>
    %c0_16 = arith.constant 0 : index
    %c0_17 = arith.constant 0 : index
    %56 = vector.load %arg9[%c0_16, %c0_17] : memref<131x65xbf16, #tpu.memory_space<vmem>>, vector<131x65xbf16>
    %cst_18 = arith.constant dense<0.000000e+00> : vector<32x65xf32>
    %57 = tpu.matmul %55, %56, %cst_18 {dimension_numbers = #tpu.dot_dimension_numbers<[1], [0], [0], [1], [0, 0, 1, 1], [], []>} : vector<32x131xbf16>, vector<131x65xbf16>, vector<32x65xf32> -> vector<32x65xf32>
    %58 = vector.extract_strided_slice %57 {offsets = [0, 0], sizes = [32, 49], strides = [1, 1]} : vector<32x65xf32> to vector<32x49xf32>
    %59 = vector.extract_strided_slice %57 {offsets = [0, 1], sizes = [32, 49], strides = [1, 1]} : vector<32x65xf32> to vector<32x49xf32>
    %60 = vector.extract_strided_slice %57 {offsets = [0, 2], sizes = [32, 49], strides = [1, 1]} : vector<32x65xf32> to vector<32x49xf32>
    %61 = vector.extract_strided_slice %57 {offsets = [0, 7], sizes = [32, 49], strides = [1, 1]} : vector<32x65xf32> to vector<32x49xf32>
    %62 = vector.extract_strided_slice %57 {offsets = [0, 8], sizes = [32, 49], strides = [1, 1]} : vector<32x65xf32> to vector<32x49xf32>
    %63 = vector.extract_strided_slice %57 {offsets = [0, 9], sizes = [32, 49], strides = [1, 1]} : vector<32x65xf32> to vector<32x49xf32>
    %64 = vector.extract_strided_slice %57 {offsets = [0, 14], sizes = [32, 49], strides = [1, 1]} : vector<32x65xf32> to vector<32x49xf32>
    %65 = vector.extract_strided_slice %57 {offsets = [0, 15], sizes = [32, 49], strides = [1, 1]} : vector<32x65xf32> to vector<32x49xf32>
    %66 = vector.extract_strided_slice %57 {offsets = [0, 16], sizes = [32, 49], strides = [1, 1]} : vector<32x65xf32> to vector<32x49xf32>
    %67 = tpu.concatenate %58, %59, %60, %61, %62, %63, %64, %65, %66 in 0 : vector<32x49xf32>, vector<32x49xf32>, vector<32x49xf32>, vector<32x49xf32>, vector<32x49xf32>, vector<32x49xf32>, vector<32x49xf32>, vector<32x49xf32>, vector<32x49xf32> -> vector<288x49xf32>
    %68 = arith.truncf %67 : vector<288x49xf32> to vector<288x49xbf16>
    %c0_19 = arith.constant 0 : index
    %c0_20 = arith.constant 0 : index
    %69 = vector.load %arg6[%c0_19, %c0_20] : memref<16x288xbf16, #tpu.memory_space<vmem>>, vector<16x288xbf16>
    %cst_21 = arith.constant dense<0.000000e+00> : vector<16x49xf32>
    %70 = tpu.matmul %69, %68, %cst_21 {dimension_numbers = #tpu.dot_dimension_numbers<[1], [0], [0], [1], [0, 0, 1, 1], [], []>} : vector<16x288xbf16>, vector<288x49xbf16>, vector<16x49xf32> -> vector<16x49xf32>
    %c0_22 = arith.constant 0 : index
    %c0_23 = arith.constant 0 : index
    %71 = vector.load %arg7[%c0_22, %c0_23] : memref<16x1xf32, #tpu.memory_space<vmem>>, vector<16x1xf32>
    %72 = vector.broadcast %71 : vector<16x1xf32> to vector<16x49xf32>
    %73 = arith.addf %70, %72 : vector<16x49xf32>
    %cst_24 = arith.constant 0.000000e+00 : f32
    %74 = vector.broadcast %cst_24 : f32 to vector<16x49xf32>
    %75 = arith.maximumf %73, %74 : vector<16x49xf32>
    %76 = arith.truncf %75 : vector<16x49xf32> to vector<16x49xbf16>
    %c0_25 = arith.constant 0 : index
    %c0_26 = arith.constant 0 : index
    %77 = vector.load %arg10[%c0_25, %c0_26] : memref<49x2048xbf16, #tpu.memory_space<vmem>>, vector<49x2048xbf16>
    %cst_27 = arith.constant dense<0.000000e+00> : vector<16x2048xf32>
    %78 = tpu.matmul %76, %77, %cst_27 {dimension_numbers = #tpu.dot_dimension_numbers<[1], [0], [0], [1], [0, 0, 1, 1], [], []>} : vector<16x49xbf16>, vector<49x2048xbf16>, vector<16x2048xf32> -> vector<16x2048xf32>
    %c0_28 = arith.constant 0 : index
    %c0_29 = arith.constant 0 : index
    %79 = vector.load %arg11[%c0_28, %c0_29] : memref<16x2048xf32, #tpu.memory_space<vmem>>, vector<16x2048xf32>
    %80 = arith.mulf %78, %79 : vector<16x2048xf32>
    %cst_30 = arith.constant dense<0.000000e+00> : vector<2048xf32>
    %81 = vector.multi_reduction <add>, %80, %cst_30 [0] : vector<16x2048xf32> to vector<2048xf32>
    %82 = vector.shape_cast %81 : vector<2048xf32> to vector<1x2048xf32>
    %c0_31 = arith.constant 0 : index
    %c0_32 = arith.constant 0 : index
    %83 = vector.load %arg12[%c0_31, %c0_32] : memref<1x128xf32, #tpu.memory_space<vmem>>, vector<1x128xf32>
    %84 = vector.extract_strided_slice %82 {offsets = [0, 0], sizes = [1, 128], strides = [1, 1]} : vector<1x2048xf32> to vector<1x128xf32>
    %85 = arith.addf %83, %84 : vector<1x128xf32>
    %86 = vector.extract_strided_slice %82 {offsets = [0, 128], sizes = [1, 128], strides = [1, 1]} : vector<1x2048xf32> to vector<1x128xf32>
    %87 = arith.addf %85, %86 : vector<1x128xf32>
    %88 = vector.extract_strided_slice %82 {offsets = [0, 256], sizes = [1, 128], strides = [1, 1]} : vector<1x2048xf32> to vector<1x128xf32>
    %89 = arith.addf %87, %88 : vector<1x128xf32>
    %90 = vector.extract_strided_slice %82 {offsets = [0, 384], sizes = [1, 128], strides = [1, 1]} : vector<1x2048xf32> to vector<1x128xf32>
    %91 = arith.addf %89, %90 : vector<1x128xf32>
    %92 = vector.extract_strided_slice %82 {offsets = [0, 512], sizes = [1, 128], strides = [1, 1]} : vector<1x2048xf32> to vector<1x128xf32>
    %93 = arith.addf %91, %92 : vector<1x128xf32>
    %94 = vector.extract_strided_slice %82 {offsets = [0, 640], sizes = [1, 128], strides = [1, 1]} : vector<1x2048xf32> to vector<1x128xf32>
    %95 = arith.addf %93, %94 : vector<1x128xf32>
    %96 = vector.extract_strided_slice %82 {offsets = [0, 768], sizes = [1, 128], strides = [1, 1]} : vector<1x2048xf32> to vector<1x128xf32>
    %97 = arith.addf %95, %96 : vector<1x128xf32>
    %98 = vector.extract_strided_slice %82 {offsets = [0, 896], sizes = [1, 128], strides = [1, 1]} : vector<1x2048xf32> to vector<1x128xf32>
    %99 = arith.addf %97, %98 : vector<1x128xf32>
    %100 = vector.extract_strided_slice %82 {offsets = [0, 1024], sizes = [1, 128], strides = [1, 1]} : vector<1x2048xf32> to vector<1x128xf32>
    %101 = arith.addf %99, %100 : vector<1x128xf32>
    %102 = vector.extract_strided_slice %82 {offsets = [0, 1152], sizes = [1, 128], strides = [1, 1]} : vector<1x2048xf32> to vector<1x128xf32>
    %103 = arith.addf %101, %102 : vector<1x128xf32>
    %104 = vector.extract_strided_slice %82 {offsets = [0, 1280], sizes = [1, 128], strides = [1, 1]} : vector<1x2048xf32> to vector<1x128xf32>
    %105 = arith.addf %103, %104 : vector<1x128xf32>
    %106 = vector.extract_strided_slice %82 {offsets = [0, 1408], sizes = [1, 128], strides = [1, 1]} : vector<1x2048xf32> to vector<1x128xf32>
    %107 = arith.addf %105, %106 : vector<1x128xf32>
    %108 = vector.extract_strided_slice %82 {offsets = [0, 1536], sizes = [1, 128], strides = [1, 1]} : vector<1x2048xf32> to vector<1x128xf32>
    %109 = arith.addf %107, %108 : vector<1x128xf32>
    %110 = vector.extract_strided_slice %82 {offsets = [0, 1664], sizes = [1, 128], strides = [1, 1]} : vector<1x2048xf32> to vector<1x128xf32>
    %111 = arith.addf %109, %110 : vector<1x128xf32>
    %112 = vector.extract_strided_slice %82 {offsets = [0, 1792], sizes = [1, 128], strides = [1, 1]} : vector<1x2048xf32> to vector<1x128xf32>
    %113 = arith.addf %111, %112 : vector<1x128xf32>
    %114 = vector.extract_strided_slice %82 {offsets = [0, 1920], sizes = [1, 128], strides = [1, 1]} : vector<1x2048xf32> to vector<1x128xf32>
    %115 = arith.addf %113, %114 : vector<1x128xf32>
    %c0_33 = arith.constant 0 : index
    %c0_34 = arith.constant 0 : index
    %c0_35 = arith.constant 0 : index
    %116 = vector.load %arg13[%c0_33, %c0_34, %c0_35] : memref<1x1x128xf32, #tpu.memory_space<vmem>>, vector<1x1x128xf32>
    %117 = vector.shape_cast %116 : vector<1x1x128xf32> to vector<1x128xf32>
    %118 = vector.shape_cast %115 : vector<1x128xf32> to vector<1x1x128xf32>
    tpu.vector_store %arg13[%c0_33, %c0_34, %c0_35], %118 {strides = array<i32>} : memref<1x1x128xf32, #tpu.memory_space<vmem>>, vector<1x1x128xf32>,
    return
  }
  func.func @transform_0(%arg0: i32) -> (i32, i32, i32) {
    %c0_i32 = arith.constant 0 : i32
    %c0_i32_0 = arith.constant 0 : i32
    %c0_i32_1 = arith.constant 0 : i32
    return %arg0, %c0_i32, %c0_i32_0 : i32, i32, i32
  }
  func.func @transform_1(%arg0: i32) -> (i32, i32) {
    %c0_i32 = arith.constant 0 : i32
    %c0_i32_0 = arith.constant 0 : i32
    %c0_i32_1 = arith.constant 0 : i32
    return %c0_i32, %c0_i32_0 : i32, i32
  }
  func.func @transform_2(%arg0: i32) -> (i32, i32) {
    %c0_i32 = arith.constant 0 : i32
    %c0_i32_0 = arith.constant 0 : i32
    %c0_i32_1 = arith.constant 0 : i32
    return %c0_i32, %c0_i32_0 : i32, i32
  }
  func.func @transform_3(%arg0: i32) -> (i32, i32) {
    %c0_i32 = arith.constant 0 : i32
    %c0_i32_0 = arith.constant 0 : i32
    %c0_i32_1 = arith.constant 0 : i32
    return %c0_i32, %c0_i32_0 : i32, i32
  }
  func.func @transform_4(%arg0: i32) -> (i32, i32) {
    %c0_i32 = arith.constant 0 : i32
    %c0_i32_0 = arith.constant 0 : i32
    %c0_i32_1 = arith.constant 0 : i32
    return %c0_i32, %c0_i32_0 : i32, i32
  }
  func.func @transform_5(%arg0: i32) -> (i32, i32) {
    %c0_i32 = arith.constant 0 : i32
    %c0_i32_0 = arith.constant 0 : i32
    %c0_i32_1 = arith.constant 0 : i32
    return %c0_i32, %c0_i32_0 : i32, i32
  }
  func.func @transform_6(%arg0: i32) -> (i32, i32) {
    %c0_i32 = arith.constant 0 : i32
    %c0_i32_0 = arith.constant 0 : i32
    %c0_i32_1 = arith.constant 0 : i32
    return %c0_i32, %c0_i32_0 : i32, i32
  }
  func.func @transform_7(%arg0: i32) -> (i32, i32) {
    %c0_i32 = arith.constant 0 : i32
    %c0_i32_0 = arith.constant 0 : i32
    %c0_i32_1 = arith.constant 0 : i32
    return %c0_i32, %c0_i32_0 : i32, i32
  }
  func.func @transform_8(%arg0: i32) -> (i32, i32) {
    %c0_i32 = arith.constant 0 : i32
    %c0_i32_0 = arith.constant 0 : i32
    %c0_i32_1 = arith.constant 0 : i32
    return %c0_i32, %c0_i32_0 : i32, i32
  }
  func.func @transform_9(%arg0: i32) -> (i32, i32) {
    %c0_i32 = arith.constant 0 : i32
    %c0_i32_0 = arith.constant 0 : i32
    %c0_i32_1 = arith.constant 0 : i32
    return %c0_i32, %c0_i32_0 : i32, i32
  }
  func.func @transform_10(%arg0: i32) -> (i32, i32) {
    %c0_i32 = arith.constant 0 : i32
    %c0_i32_0 = arith.constant 0 : i32
    %c0_i32_1 = arith.constant 0 : i32
    return %c0_i32, %c0_i32_0 : i32, i32
  }
  func.func @transform_11(%arg0: i32) -> (i32, i32) {
    %c0_i32 = arith.constant 0 : i32
    %c0_i32_0 = arith.constant 0 : i32
    %c0_i32_1 = arith.constant 0 : i32
    return %c0_i32, %c0_i32_0 : i32, i32
  }
  func.func @transform_12(%arg0: i32) -> (i32, i32, i32) {
    %c0_i32 = arith.constant 0 : i32
    %c0_i32_0 = arith.constant 0 : i32
    %c0_i32_1 = arith.constant 0 : i32
    return %arg0, %c0_i32, %c0_i32_0 : i32, i32, i32
  }
}

</mosaic_0001>

<bundles_post_ra>
// kernel: _lambda_.1
= control target key start
LH: loop header
LB: loop body
LE: loop exit
PB: predicated region body
PF: predicated region fallthrough
CT: control target
= control target key end

     0   :  { %s4750_s0 = inlined_call_operand.vmem [shape: f32[2,8,530], index: 0, kind: input, shape index: {}]   ;;  %s4751_s1 = inlined_call_operand.vmem [shape: bf16[16,72], index: 1, kind: input, shape index: {}]   ;;  %s4752_s2 = inlined_call_operand.vmem [shape: f32[16,1], index: 2, kind: input, shape index: {}]   ;;  %s4753_s3 = inlined_call_operand.vmem [shape: bf16[32,144], index: 3, kind: input, shape index: {}]   ;;  %s4754_s4 = inlined_call_operand.vmem [shape: f32[32,1], index: 4, kind: input, shape index: {}]   ;;  %s4755_s5 = inlined_call_operand.vmem [shape: bf16[16,288], index: 5, kind: input, shape index: {}]   ;;  %s4756_s6 = inlined_call_operand.vmem [shape: f32[16,1], index: 6, kind: input, shape index: {}]   ;;  %s4757_s7 = inlined_call_operand.vmem [shape: bf16[461,170], index: 7, kind: input, shape index: {}]   ;;  %s4758_s8 = inlined_call_operand.vmem [shape: bf16[131,65], index: 8, kind: input, shape index: {}]   ;;  %s4759_s9 = inlined_call_operand.vmem [shape: bf16[49,2048], index: 9, kind: input, shape index: {}]   ;;  %s4760_s10 = inlined_call_operand.vmem [shape: f32[16,2048], index: 10, kind: input, shape index: {}]   ;;  %s4761_s11 = inlined_call_operand.vmem [shape: f32[1,128], index: 11, kind: input, shape index: {}]   ;;  %s4762_s12 = inlined_call_operand.hbm [shape: f32[2,1,128], index: 12, kind: output, shape index: {}]  }
   0x1   :  { %4775 = sst [smem:[#allocation5_spill]] %s4750_s0 }
   0x2   :  { %4776 = sst [smem:[#allocation6_spill]] %s4751_s1 }
   0x3   :  { %4777 = sst [smem:[#allocation7_spill]] %s4752_s2 }
   0x4   :  { %17 = vsyncpa [#allocation3], 0 }
   0x5   :  { %19 = vsyncpa [#allocation3 + $0x1], 0  ;;  %s3822_s21 = smov 0   ;;  %s3824_s22 = smov 0  }
   0x6   :  { %s3826_s23 = smov 0   ;;  %s3828_s24 = smov 0  }
   0x7 LB: > { %s3843_s25 = sadd.s32 4294967295, %s3732_s24   ;;  %s2961_s26 = sadd.s32 4294967294, %s3732_s24   ;;  %s3732_s24 = sphi %s3828_s24, %s4792_s24   ;;  %s3728_s23 = sphi %s3826_s23, %s4791_s23   ;;  %s3724_s22 = sphi %s3824_s22, %s4790_s22   ;;  %s3720_s21 = sphi %s3822_s21, %s4789_s21  }
   0x8   : > { %s3847_s27 = sadd.s32 1, %s3732_s24   ;;  %s289_s28 = sadd.s32 1, %s3728_s23 }
   0x9   : > { %s286_s29 = ssub.s32 %s3732_s24, %s3847_s27  ;;  %p299_p0 = scmp.ne.s32.totalorder %s3728_s23, %s3724_s22 }
   0xa   : > { %p287_p1 = scmp.eq.s32.totalorder %s286_s29, 0  ;;  %p300_p2 = scmp.eq.s32.totalorder %s3843_s25, 1 }
   0xb   : > { %p305_p3 = scmp.ne.s32.totalorder %s3724_s22, %s3720_s21  ;;  %p306_p4 = scmp.eq.s32.totalorder %s2961_s26, 1 }
   0xc   : > { %s3858_s30 = scalar_select %p287_p1, %s3728_s23, %s289_s28  }
   0xd   : > { %p3860_p5 = por %p300_p2, %p299_p0  ;;  %p3864_p6 = por %p306_p4, %p305_p3 }
   0xe   : > { %p2964_p7 = scmp.ge.s32.totalorder %s3732_s24, 1  ;;  %p365_p8 = scmp.lt.s32.totalorder %s3732_s24, 3 }
  0x10   : > { %p366_p9 = pnand %p2964_p7, %p365_p8 }
  0x11   : > { %p406_p10 = scmp.lt.s32.totalorder (!%p366_p9), %s3843_s25, 1  ;;  %s4780_s0 = sld [smem:[#allocation5_spill]] (!%p366_p9)  ;;  %v3741_v8 = vmov (!%p366_p9), 0   ;;  %vm429_vm0 = vcmask (!%p366_p9), 1039360   ;;  %vm445_vm1 = vcmask (!%p366_p9), 1031168   ;;  %vm461_vm2 = vcmask (!%p366_p9), 867328  }
  0x12   : > { %369 = sbr.rel (%p366_p9) target bundleno = 2445 (0x98d), region = 68  ;;  %s4765_s20 = smov (!%p366_p9), 126   ;;  %647 = vmatprep.mubr.bf16.mxu0 (!%p366_p9), %v3741_v8  ;;  %690 = vmatprep.mubr.bf16.mxu1 (!%p366_p9), %v3741_v8  ;;  %vm477_vm3 = vcmask (!%p366_p9), 859136   ;;  %vm493_vm4 = vcmask (!%p366_p9), 850944   ;;  %vm512_vm5 = vcmask (!%p366_p9), 687104   ;;  %vm531_vm6 = vcmask (!%p366_p9), 678912  }
  0x13   : > { %s4769_s26 = smov (!%p366_p9), 127   ;;  %s4767_s28 = smov (!%p366_p9), 106   ;;  %3305 = vset.pattern.permute.xlu1 (!%p366_p9), %v3741_v8  ;;  %3306 = vset.pattern.permute.xlu0 (!%p366_p9), %v3741_v8  ;;  %vm550_vm7 = vcmask (!%p366_p9), 670720   ;;  %vm602_vm8 = vcmask (!%p366_p9), 1043456   ;;  %vm598_vm9 = vcmask (!%p366_p9), 588800   ;;  %vm1151_vm10 = vcmask (!%p366_p9), 629760  }
  0x14   : > { %s4763_s29 = smov (!%p366_p9), 104   ;;  %s3740_s17 = smov (!%p366_p9), 83   ;;  %vm1155_vm11 = vcmask (!%p366_p9), 1045504   ;;  %vm1156_vm12 = vcmask (!%p366_p9), 1046528   ;;  %vm1436_vm13 = vcmask (!%p366_p9), 130048   ;;  %vm1291_vm14 = vcmask (!%p366_p9), 949248  }
  0x15   : > { %s3742_s18 = smov (!%p366_p9), 82   ;;  %s4781_s2 = sld [smem:[#allocation7_spill]] (!%p366_p9)  ;;  %vm1306_vm15 = vcmask (!%p366_p9), 941056  }
  0x16   : > { %s4782_s1 = sld [smem:[#allocation6_spill]] (!%p366_p9) }
  0x19   : > { %s407_s15 = scalar_select %p406_p10, %s3843_s25, 1 }
  0x1b   : > { %s3163_s16 = smul.u32 40, %s407_s15  ;;  %s3738_s15 = smov 105   ;;  %v581_v11 = vld [vmem:[%s4781_s2] sm:$0xff]  ;;  %v582_v12 = vld [vmem:[%s4781_s2 + $0x8] sm:$0xff] }
  0x1c   : > { %s3752_s2 = smov 112  }
  0x1d   : > { %s410_s19 = scalar_lea.vmem %s4780_s0, %s3163_s16  ;;  %s3739_s16 = smov 84  }
  0x1e   : > { %v3875_v0 = vld [vmem:[%s410_s19 + $0x8] sm:$0xff]  ;;  %v3877_v1 = vld [vmem:[%s410_s19 + $0x10] sm:$0xff]  ;;  %v3879_v2 = vld [vmem:[%s410_s19] sm:$0xff]  ;;  %s4785_s0 = smov 126  }
  0x1f   : > { %v3235_v3 = vpack.i.bf16 %v3877_v1, %v3875_v0  ;;  %v415_v4 = vld [vmem:[%s410_s19 + $0x18] sm:$0xff]  ;;  %v416_v6 = vld [vmem:[%s410_s19 + $0x20] sm:$0xff]  ;;  %v3295_v10 = vpack.i.bf16 %v3875_v0, %v3879_v2  ;;  %s3747_s19 = smov 103  }
  0x20   : > { %v3230_v5 = vpack.i.bf16 %v415_v4, %v3879_v2  ;;  %v3280_v7 = vpack.i.bf16 %v416_v6, %v415_v4  ;;  %v3300_v9 = vpack.i.bf16 %v415_v4, %v3877_v1 }
  0x21   : > { %3236 = vrot.lane.b32.xlu1 %v3235_v3, %s4765_s20  ;;  %3226 = vrot.lane.b32.xlu0 %v3235_v3, %s4769_s26 }
  0x25   : > { %3241 = vrot.lane.b32.xlu1 %v3235_v3, %s4767_s28  ;;  %3231 = vrot.lane.b32.xlu0 %v3230_v5, %s4769_s26 }
  0x29   : > { %3251 = vrot.lane.b32.xlu1 %v3230_v5, %s4767_s28  ;;  %3246 = vrot.lane.b32.xlu0 %v3230_v5, %s4765_s20  ;;  %s4786_s20 = smov 104   ;;  %s3751_s28 = smov 113  }
  0x2d   : > { %3261 = vrot.lane.b32.xlu1 %v3235_v3, %s4763_s29  ;;  %3256 = vrot.lane.b32.xlu0 %v3235_v3, %s3738_s15 }
  0x31   : > { %3271 = vrot.lane.b32.xlu1 %v3230_v5, %s4763_s29  ;;  %3266 = vrot.lane.b32.xlu0 %v3230_v5, %s3738_s15  ;;  %s4783_s15 = smov 106   ;;  %s3745_s29 = smov 115  }
  0x35   : > { %3281 = vrot.lane.b32.xlu1 %v3280_v7, %s3739_s16  ;;  %3276 = vrot.lane.b32.xlu0 %v3235_v3, %s3739_s16 }
  0x39   : > { %3291 = vrot.lane.b32.xlu1 %v3280_v7, %s3740_s17  ;;  %3286 = vrot.lane.b32.xlu0 %v3235_v3, %s3740_s17 }
  0x3d   : > { %521 = vrot.lane.b32.xlu1 %v3879_v2, %s3740_s17  ;;  %502 = vrot.lane.b32.xlu0 %v3879_v2, %s3739_s16  ;;  %s4784_s17 = smov 127   ;;  %s4773_s16 = smov 114  }
  0x41   : > { %3301 = vrot.lane.b32.xlu1 %v3300_v9, %s3742_s18  ;;  %3296 = vrot.lane.b32.xlu0 %v3295_v10, %s3742_s18 }
  0x45   : > { %548 = vrot.lane.b32.xlu0 %v416_v6, %s3742_s18  ;;  %585 = vperm.xlu1 %3305, %v581_v11  }
  0x49   : > { %590 = vperm.xlu0 %3306, %v582_v12  }
  0x93   : > { %v3237_v13 = vpop.permute.xlu1 %3236  ;;  %v3227_v14 = vpop.permute.xlu0 %3226 }
  0x94   : > { %v3229_v15 = vunpack.i.h.bf16 %v3227_v14  ;;  %v3228_v16 = vunpack.i.l.bf16 %v3227_v14  ;;  %v3239_v17 = vunpack.i.h.bf16 %v3237_v13  ;;  %v3238_v18 = vunpack.i.l.bf16 %v3237_v13 }
  0x96   : > { %v431_v19 = vsel %vm429_vm0, %v3228_v16, %v3229_v15  ;;  %v447_v27 = vsel %vm445_vm1, %v3238_v18, %v3239_v17 }
  0x97   : > { %v3242_v20 = vpop.permute.xlu1 %3241  ;;  %v3232_v21 = vpop.permute.xlu0 %3231  ;;  %v560_v22 = vpack.c.bf16 %v431_v19, %v3875_v0 }
  0x98   : > { %v3244_v23 = vunpack.i.h.bf16 %v3242_v20  ;;  %v3243_v24 = vunpack.i.l.bf16 %v3242_v20  ;;  %v3234_v25 = vunpack.i.h.bf16 %v3232_v21  ;;  %v3233_v26 = vunpack.i.l.bf16 %v3232_v21 }
  0x99   : > { %615 = vmatprep.subr.bf16.mxu0 %v560_v22 }
  0x9a   : > { %v562_v28 = vpack.c.bf16 %v3234_v25, %v415_v4  ;;  %v430_v29 = vsel %vm429_vm0, %v3233_v26, %v3228_v16  ;;  %v432_v30 = vsel %vm429_vm0, %v3229_v15, %v3234_v25  ;;  %v463_v31 = vsel %vm461_vm2, %v3243_v24, %v3244_v23 }
  0x9b   : > { %v3252_v32 = vpop.permute.xlu1 %3251  ;;  %v3247_v33 = vpop.permute.xlu0 %3246  ;;  %v559_v34 = vpack.c.bf16 %v430_v29, %v3879_v2  ;;  %v561_v35 = vpack.c.bf16 %v432_v30, %v3877_v1  ;;  %v564_v36 = vpack.c.bf16 %v463_v31, %v447_v27 }
  0x9c   : > { %v3254_v37 = vunpack.i.h.bf16 %v3252_v32  ;;  %v3253_v38 = vunpack.i.l.bf16 %v3252_v32  ;;  %v3249_v39 = vunpack.i.h.bf16 %v3247_v33  ;;  %v3248_v40 = vunpack.i.l.bf16 %v3247_v33  ;;  %658 = vmatprep.subr.bf16.mxu1 %v562_v28 }
  0x9d   : > { %616 = vmatpush1.bf16.msra.mxu0 %v559_v34  ;;  %659 = vmatpush1.bf16.msra.mxu1 %v561_v35 }
  0x9e   : > { %v566_v41 = vpack.c.bf16 %v3254_v37, %v3249_v39  ;;  %617 = vmatprep.subr.bf16.mxu0 %v564_v36  ;;  %v446_v42 = vsel %vm445_vm1, %v3248_v40, %v3238_v18  ;;  %v462_v43 = vsel %vm461_vm2, %v3253_v38, %v3243_v24  ;;  %v448_v44 = vsel %vm445_vm1, %v3239_v17, %v3249_v39 }
  0x9f   : > { %v3262_v45 = vpop.permute.xlu1 %3261  ;;  %v3257_v46 = vpop.permute.xlu0 %3256  ;;  %v563_v47 = vpack.c.bf16 %v462_v43, %v446_v42  ;;  %v464_v48 = vsel %vm461_vm2, %v3244_v23, %v3254_v37 }
  0xa0   : > { %v3264_v49 = vunpack.i.h.bf16 %v3262_v45  ;;  %v3263_v50 = vunpack.i.l.bf16 %v3262_v45  ;;  %v3259_v51 = vunpack.i.h.bf16 %v3257_v46  ;;  %v3258_v52 = vunpack.i.l.bf16 %v3257_v46  ;;  %660 = vmatprep.subr.bf16.mxu1 %v566_v41 }
  0xa1   : > { %618 = vmatpush1.bf16.msra.mxu0 %v563_v47  ;;  %v565_v53 = vpack.c.bf16 %v464_v48, %v448_v44 }
  0xa2   : > { %v479_v54 = vsel %vm477_vm3, %v3258_v52, %v3259_v51  ;;  %v495_v55 = vsel %vm493_vm4, %v3263_v50, %v3264_v49 }
  0xa3   : > { %661 = vmatpush1.bf16.msra.mxu1 %v565_v53  ;;  %v3272_v56 = vpop.permute.xlu1 %3271  ;;  %v3267_v57 = vpop.permute.xlu0 %3266  ;;  %v568_v58 = vpack.c.bf16 %v495_v55, %v479_v54 }
  0xa4   : > { %v3274_v59 = vunpack.i.h.bf16 %v3272_v56  ;;  %v3273_v60 = vunpack.i.l.bf16 %v3272_v56  ;;  %v3269_v61 = vunpack.i.h.bf16 %v3267_v57  ;;  %v3268_v62 = vunpack.i.l.bf16 %v3267_v57 }
  0xa5   : > { %619 = vmatprep.subr.bf16.mxu0 %v568_v58 }
  0xa6   : > { %v570_v63 = vpack.c.bf16 %v3274_v59, %v3269_v61  ;;  %v478_v0 = vsel %vm477_vm3, %v3268_v62, %v3258_v52  ;;  %v494_v1 = vsel %vm493_vm4, %v3273_v60, %v3263_v50  ;;  %v480_v2 = vsel %vm477_vm3, %v3259_v51, %v3269_v61  ;;  %v3547_v50 = vld [vmem:[%s4782_s1] sm:$0xff]  }
  0xa7   : > { %v3282_v3 = vpop.permute.xlu1 %3281  ;;  %v3277_v4 = vpop.permute.xlu0 %3276  ;;  %v567_v5 = vpack.c.bf16 %v494_v1, %v478_v0  ;;  %v496_v6 = vsel %vm493_vm4, %v3264_v49, %v3274_v59  ;;  %vm1365_vm3 = vcmask 834560  }
  0xa8   : > { %v3284_v7 = vunpack.i.h.bf16 %v3282_v3  ;;  %662 = vmatprep.subr.bf16.mxu1 %v570_v63  ;;  %v3283_v9 = vunpack.i.l.bf16 %v3282_v3  ;;  %v3279_v10 = vunpack.i.h.bf16 %v3277_v4  ;;  %v3278_v11 = vunpack.i.l.bf16 %v3277_v4 }
  0xa9   : > { %620 = vmatpush1.bf16.msra.mxu0 %v567_v5  ;;  %v569_v12 = vpack.c.bf16 %v496_v6, %v480_v2 }
  0xaa   : > { %v514_v19 = vsel %vm512_vm5, %v3278_v11, %v3279_v10  ;;  %v516_v20 = vsel %vm512_vm5, %v3283_v9, %v3284_v7  ;;  %v515_v23 = vsel %vm512_vm5, %v3279_v10, %v3283_v9 }
  0xab   : > { %663 = vmatpush1.bf16.msra.mxu1 %v569_v12  ;;  %v3292_v13 = vpop.permute.xlu1 %3291  ;;  %v3287_v14 = vpop.permute.xlu0 %3286 }
  0xac   : > { %v3294_v15 = vunpack.i.h.bf16 %v3292_v13  ;;  %v3293_v16 = vunpack.i.l.bf16 %v3292_v13  ;;  %v3289_v17 = vunpack.i.h.bf16 %v3287_v14  ;;  %v3288_v18 = vunpack.i.l.bf16 %v3287_v14 }
  0xae   : > { %v533_v21 = vsel %vm531_vm6, %v3288_v18, %v3289_v17  ;;  %v535_v22 = vsel %vm531_vm6, %v3293_v16, %v3294_v15  ;;  %v534_v24 = vsel %vm531_vm6, %v3289_v17, %v3293_v16  ;;  %v3548_v17 = vld [vmem:[%s4757_s7] ss:$8 sps:$4 sm:$0xff]  }
  0xaf   : > { %v522_v25 = vpop.permute.xlu1 %521  ;;  %v503_v26 = vpop.permute.xlu0 %502  ;;  %v572_v27 = vpack.c.bf16 %v533_v21, %v514_v19  ;;  %v574_v28 = vpack.c.bf16 %v535_v22, %v516_v20  ;;  %v573_v29 = vpack.c.bf16 %v534_v24, %v515_v23  ;;  %v3553_v19 = vld [vmem:[%s4757_s7 + $0x14] ss:$8 sps:$4 sm:$0xff]   ;;  %v3551_v20 = vld [vmem:[%s4757_s7 + $0x10] ss:$8 sps:$4 sm:$0xff]   ;;  %v3556_v22 = vld [vmem:[%s4757_s7 + $0x24] ss:$8 sps:$4 sm:$0xff]  }
  0xb0   : > { %v532_v30 = vsel %vm531_vm6, %v522_v25, %v3288_v18  ;;  %v513_v31 = vsel %vm512_vm5, %v503_v26, %v3278_v11  ;;  %v3550_v18 = vld [vmem:[%s4757_s7 + $0x4] ss:$8 sps:$4 sm:$0xff]   ;;  %v3554_v23 = vld [vmem:[%s4757_s7 + $0x20] ss:$8 sps:$4 sm:$0xff]   ;;  %v3559_v24 = vld [vmem:[%s4757_s7 + $0x34] ss:$8 sps:$4 sm:$0xff]  }
  0xb1   : > { %v571_v32 = vpack.c.bf16 %v532_v30, %v513_v31  ;;  %621 = vmatprep.subr.bf16.mxu0 %v572_v27  ;;  %664 = vmatprep.subr.bf16.mxu1 %v574_v28  ;;  %v3557_v25 = vld [vmem:[%s4757_s7 + $0x30] ss:$8 sps:$4 sm:$0xff]   ;;  %v3562_v26 = vld [vmem:[%s4757_s7 + $0x44] ss:$8 sps:$4 sm:$0xff]   ;;  %v3560_v27 = vld [vmem:[%s4757_s7 + $0x40] ss:$8 sps:$4 sm:$0xff]  }
  0xb2   : > { %665 = vmatpush1.bf16.msra.mxu1 %v573_v29  ;;  %v3565_v28 = vld [vmem:[%s4757_s7 + $0x54] ss:$8 sps:$4 sm:$0xff]   ;;  %v3563_v29 = vld [vmem:[%s4757_s7 + $0x50] ss:$8 sps:$4 sm:$0xff]   ;;  %v3568_v30 = vld [vmem:[%s4757_s7 + $0x64] ss:$8 sps:$4 sm:$0xff]  }
  0xb3   : > { %v3302_v33 = vpop.permute.xlu1 %3301  ;;  %v3297_v34 = vpop.permute.xlu0 %3296  ;;  %622 = vmatpush1.bf16.msra.mxu0 %v571_v32  ;;  %v3566_v31 = vld [vmem:[%s4757_s7 + $0x60] ss:$8 sps:$4 sm:$0xff]   ;;  %v3571_v32 = vld [vmem:[%s4757_s7 + $0x74] ss:$8 sps:$4 sm:$0xff]   ;;  %vm1672_vm5 = vcmask 1041408   ;;  %vm3755_vm6 = vmmov 0  }
  0xb4   : > { %v3304_v35 = vunpack.i.h.bf16 %v3302_v33  ;;  %v3303_v36 = vunpack.i.l.bf16 %v3302_v33  ;;  %v3299_v37 = vunpack.i.h.bf16 %v3297_v34  ;;  %v3298_v38 = vunpack.i.l.bf16 %v3297_v34  ;;  %v3569_v33 = vld [vmem:[%s4757_s7 + $0x70] ss:$8 sps:$4 sm:$0xff]   ;;  %v3574_v34 = vld [vmem:[%s4757_s7 + $0x84] ss:$8 sps:$4 sm:$0xff]  }
  0xb6   : > { %v552_v39 = vsel %vm550_vm7, %v3299_v37, %v3303_v36  ;;  %v551_v40 = vsel %vm550_vm7, %v3298_v38, %v3299_v37  ;;  %v553_v41 = vsel %vm550_vm7, %v3303_v36, %v3304_v35  ;;  %v3577_v36 = vld [vmem:[%s4757_s7 + $0x94] ss:$8 sps:$4 sm:$0xff]   ;;  %v3575_v37 = vld [vmem:[%s4757_s7 + $0x90] ss:$8 sps:$4 sm:$0xff]   ;;  %v3580_v38 = vld [vmem:[%s4757_s7 + $0xa4] ss:$8 sps:$4 sm:$0xff]  }
  0xb7   : > { %v549_v42 = vpop.permute.xlu0 %548  ;;  %v576_v43 = vpack.c.bf16 %v552_v39, %v552_v39  ;;  %v575_v44 = vpack.c.bf16 %v551_v40, %v551_v40  ;;  %v577_v45 = vpack.c.bf16 %v553_v41, %v553_v41  ;;  %v3578_v39 = vld [vmem:[%s4757_s7 + $0xa0] ss:$8 sps:$4 sm:$0xff]   ;;  %v3583_v40 = vld [vmem:[%s4757_s7 + $0xb4] ss:$8 sps:$4 sm:$0xff]   ;;  %v3581_v41 = vld [vmem:[%s4757_s7 + $0xb0] ss:$8 sps:$4 sm:$0xff]  }
  0xb8   : > { %v554_v46 = vsel %vm550_vm7, %v3304_v35, %v549_v42  ;;  %v3572_v35 = vld [vmem:[%s4757_s7 + $0x80] ss:$8 sps:$4 sm:$0xff]   ;;  %v3586_v42 = vld [vmem:[%s4757_s7 + $0xc4] ss:$8 sps:$4 sm:$0xff]   ;;  %vm1876_vm7 = vcmask 261120  }
  0xb9   : > { %v578_v47 = vpack.c.bf16 %v554_v46, %v554_v46  ;;  %2967 = vmatprep.subr.msk.bf16.mxu0 %vm602_vm8, %v576_v43  ;;  %v604_v48 = vsel %vm602_vm8, %v575_v44, 0  ;;  %v610_v49 = vsel %vm602_vm8, %v577_v45, 0  ;;  %v3584_v43 = vld [vmem:[%s4757_s7 + $0xc0] ss:$8 sps:$4 sm:$0xff]   ;;  %v3589_v44 = vld [vmem:[%s4757_s7 + $0xd4] ss:$8 sps:$4 sm:$0xff]  }
  0xba   : > { %624 = vmatpush1.bf16.msra.mxu0 %v604_v48  ;;  %v3587_v45 = vld [vmem:[%s4757_s7 + $0xd0] ss:$8 sps:$4 sm:$0xff]  }
  0xbb   : > { %2969 = vmatprep.subr.msk.bf16.mxu1 %vm602_vm8, %v578_v47  ;;  %1165 = vmatprep.subr.bf16.mxu0 %v3550_v18  ;;  %vm2301_vm8 = vcmask 400384  }
  0xbc   : > { %667 = vmatpush1.bf16.msra.mxu1 %v610_v49  ;;  %v3590_v49 = vld [vmem:[%s4757_s7 + $0xe0] ss:$8 sps:$4 sm:$0xff]  }
  0xbd   : > { %2968 = vmatmul.mubr.msk.bf16.vlgmr.msra.gmra.mrb[0].mxu0 %vm598_vm9, %v3547_v50 }
  0xbe   : > { %1166 = vmatpush1.bf16.msra.mxu0 %v3548_v17  ;;  %v3598_v17 = vld [vmem:[%s4757_s7 + $0x104] ss:$8 sps:$4 sm:$0xff]  }
  0xbf   : > { %2970 = vmatmul.mubr.msk.bf16.vlgmr.msra.gmra.mrb[0].mxu1 %vm598_vm9, %v3547_v50  ;;  %1167 = vmatprep.subr.bf16.mxu0 %v3553_v19  ;;  %v3592_v50 = vld [vmem:[%s4757_s7 + $0xe4] ss:$8 sps:$4 sm:$0xff]  }
  0xc2   : > { %1168 = vmatpush1.bf16.msra.mxu0 %v3551_v20 }
  0xc3   : > { %1169 = vmatprep.subr.bf16.mxu0 %v3556_v22 }
  0xc4   : > { %v586_v51 = vpop.permute.xlu1 %585 }
  0xc6   : > { %1170 = vmatpush1.bf16.msra.mxu0 %v3554_v23 }
  0xc7   : > { %1171 = vmatprep.subr.bf16.mxu0 %v3559_v24 }
  0xc8   : > { %v591_v54 = vpop.permute.xlu0 %590 }
  0xca   : > { %1172 = vmatpush1.bf16.msra.mxu0 %v3557_v25 }
  0xcb   : > { %1173 = vmatprep.subr.bf16.mxu0 %v3562_v26 }
  0xce   : > { %1174 = vmatpush1.bf16.msra.mxu0 %v3560_v27 }
  0xcf   : > { %1175 = vmatprep.subr.bf16.mxu0 %v3565_v28 }
  0xd2   : > { %1176 = vmatpush1.bf16.msra.mxu0 %v3563_v29 }
  0xd3   : > { %1177 = vmatprep.subr.bf16.mxu0 %v3568_v30 }
  0xd6   : > { %1178 = vmatpush1.bf16.msra.mxu0 %v3566_v31 }
  0xd7   : > { %1179 = vmatprep.subr.bf16.mxu0 %v3571_v32 }
  0xda   : > { %1180 = vmatpush1.bf16.msra.mxu0 %v3569_v33 }
  0xdb   : > { %1181 = vmatprep.subr.bf16.mxu0 %v3574_v34 }
  0xde   : > { %1182 = vmatpush1.bf16.msra.mxu0 %v3572_v35 }
  0xdf   : > { %1183 = vmatprep.subr.bf16.mxu0 %v3577_v36 }
  0xe2   : > { %1184 = vmatpush1.bf16.msra.mxu0 %v3575_v37 }
  0xe3   : > { %1185 = vmatprep.subr.bf16.mxu0 %v3580_v38 }
  0xe6   : > { %1186 = vmatpush1.bf16.msra.mxu0 %v3578_v39 }
  0xe7   : > { %1187 = vmatprep.subr.bf16.mxu0 %v3583_v40 }
  0xea   : > { %1188 = vmatpush1.bf16.msra.mxu0 %v3581_v41  ;;  %v3596_v41 = vld [vmem:[%s4757_s7 + $0x100] ss:$8 sps:$4 sm:$0xff]  }
  0xeb   : > { %1189 = vmatprep.subr.bf16.mxu0 %v3586_v42 }
  0xee   : > { %1190 = vmatpush1.bf16.msra.mxu0 %v3584_v43  ;;  %v3601_v43 = vld [vmem:[%s4757_s7 + $0x114] ss:$8 sps:$4 sm:$0xff]  }
  0xef   : > { %1191 = vmatprep.subr.bf16.mxu0 %v3589_v44 }
  0xf2   : > { %1192 = vmatpush1.bf16.msra.mxu0 %v3587_v45  ;;  %v3599_v45 = vld [vmem:[%s4757_s7 + $0x110] ss:$8 sps:$4 sm:$0xff]  }
  0xf3   : > { %1193 = vmatprep.subr.bf16.mxu0 %v3592_v50  ;;  %v3610_v50 = vld [vmem:[%s4757_s7 + $0x144] ss:$8 sps:$4 sm:$0xff]  }
  0xf6   : > { %1194 = vmatpush1.bf16.msra.mxu0 %v3590_v49  ;;  %v3605_v49 = vld [vmem:[%s4757_s7 + $0x130] ss:$8 sps:$4 sm:$0xff]  }
 0x190   : > { %v649_v52 = vpop.f32.mrb[0].mxu0 }
 0x191   : > { %v651_v53 = vpop.f32.mrb[1].mxu0  ;;  %v3948_v4 = vadd.f32 %v649_v52, %v586_v51 }
 0x192   : > { %v3936_v55 = vadd.f32 %v651_v53, %v586_v51  ;;  %v653_v56 = vpop.f32.mrb[2].mxu0  ;;  %v692_v57 = vpop.f32.mrb[0].mxu1 }
 0x193   : > { %v3938_v58 = vadd.f32 %v692_v57, %v586_v51  ;;  %v655_v59 = vpop.f32.mrb[3].mxu0  ;;  %v694_v60 = vpop.f32.mrb[1].mxu1  ;;  %v3950_v5 = vadd.f32 %v653_v56, %v591_v54  ;;  %v701_v14 = vmax.f32 %v3948_v4, 0.0 }
 0x194   : > { %v702_v61 = vmax.f32 %v3936_v55, 0.0  ;;  %v3941_v62 = vadd.f32 %v655_v59, %v591_v54  ;;  %v3943_v63 = vadd.f32 %v694_v60, %v586_v51  ;;  %v696_v0 = vpop.f32.mrb[2].mxu1  ;;  %v3595_v60 = vld [vmem:[%s4757_s7 + $0xf4] ss:$8 sps:$4 sm:$0xff]  }
 0x195   : > { %v703_v1 = vmax.f32 %v3938_v58, 0.0  ;;  %v3946_v2 = vadd.f32 %v696_v0, %v591_v54  ;;  %v698_v3 = vpop.f32.mrb[3].mxu1  ;;  %v705_v15 = vmax.f32 %v3950_v5, 0.0  ;;  %1195 = vmatprep.subr.bf16.mxu0 %v3595_v60  ;;  %v3622_v60 = vld [vmem:[%s4757_s7 + $0x184] ss:$8 sps:$4 sm:$0xff]  }
 0x196   : > { %v3952_v6 = vadd.f32 %v698_v3, %v591_v54  ;;  %v706_v9 = vmax.f32 %v3941_v62, 0.0  ;;  %v704_v10 = vmax.f32 %v3943_v63, 0.0  ;;  %v3593_v3 = vld [vmem:[%s4757_s7 + $0xf0] ss:$8 sps:$4 sm:$0xff]  }
 0x197   : > { %v3307_v7 = vpack.i.bf16 %v703_v1, %v702_v61  ;;  %v707_v11 = vmax.f32 %v3946_v2, 0.0  ;;  %v3322_v21 = vpack.i.bf16 %v705_v15, %v701_v14  ;;  %1196 = vmatpush1.bf16.msra.mxu0 %v3593_v3  ;;  %v3625_v3 = vld [vmem:[%s4757_s7 + $0x194] ss:$8 sps:$4 sm:$0xff]  }
 0x198   : > { %v708_v12 = vmax.f32 %v3952_v6, 0.0  ;;  %v3317_v16 = vpack.i.bf16 %v706_v9, %v704_v10  ;;  %1208 = vmatprep.subr.bf16.mxu0 %v3598_v17  ;;  %v3743_v17 = vmov 65535  }
 0x199   : > { %3308 = vrot.lane.b32.xlu1 %v3307_v7, %s4769_s26 }
 0x19a   : > { %v3312_v13 = vpack.i.bf16 %v708_v12, %v707_v11 }
 0x19c   : > { %3313 = vrot.lane.b32.xlu0 %v3312_v13, %s4769_s26 }
 0x19d   : > { %3318 = vrot.lane.b32.xlu1 %v3317_v16, %s4769_s26 }
 0x1a1   : > { %3323 = vrot.lane.b32.xlu1 %v3322_v21, %s4769_s26  ;;  %s4771_s26 = smov 116  }
 0x20b   : > { %v3309_v46 = vpop.permute.xlu1 %3308 }
 0x20c   : > { %v3311_v47 = vunpack.i.h.bf16 %v3309_v46  ;;  %v3310_v48 = vunpack.i.l.bf16 %v3309_v46  ;;  %v3604_v46 = vld [vmem:[%s4757_s7 + $0x124] ss:$8 sps:$4 sm:$0xff]  }
 0x20e   : > { %v3314_v51 = vpop.permute.xlu0 %3313  ;;  %v734_v56 = vsel %vm429_vm0, %v3310_v48, %v3311_v47 }
 0x20f   : > { %v3316_v52 = vunpack.i.h.bf16 %v3314_v51  ;;  %v3315_v53 = vunpack.i.l.bf16 %v3314_v51  ;;  %v3319_v54 = vpop.permute.xlu1 %3318  ;;  %v748_v19 = vmax.f32 %v702_v61, %v734_v56  ;;  %v3608_v51 = vld [vmem:[%s4757_s7 + $0x140] ss:$8 sps:$4 sm:$0xff]  }
 0x210   : > { %v3321_v57 = vunpack.i.h.bf16 %v3319_v54  ;;  %v3320_v59 = vunpack.i.l.bf16 %v3319_v54  ;;  %v3616_v54 = vld [vmem:[%s4757_s7 + $0x164] ss:$8 sps:$4 sm:$0xff]   ;;  %v3614_v56 = vld [vmem:[%s4757_s7 + $0x160] ss:$8 sps:$4 sm:$0xff]  }
 0x211   : > { %v738_v0 = vsel %vm429_vm0, %v3315_v53, %v3316_v52  ;;  %v754_v22 = vmax.f32 %v708_v12, %v3316_v52  ;;  %v3613_v52 = vld [vmem:[%s4757_s7 + $0x154] ss:$8 sps:$4 sm:$0xff]  }
 0x212   : > { %v737_v7 = vsel %vm429_vm0, %v3321_v57, %v3315_v53  ;;  %v735_v13 = vsel %vm429_vm0, %v3311_v47, %v3320_v59  ;;  %v4082_v16 = vmax.f32 %v707_v11, %v738_v0  ;;  %v750_v23 = vmax.f32 %v704_v10, %v3320_v59  ;;  %v3602_v47 = vld [vmem:[%s4757_s7 + $0x120] ss:$8 sps:$4 sm:$0xff]   ;;  %v3611_v53 = vld [vmem:[%s4757_s7 + $0x150] ss:$8 sps:$4 sm:$0xff]  }
 0x213   : > { %v3324_v18 = vpop.permute.xlu1 %3323  ;;  %v4091_v20 = vmax.f32 %v703_v1, %v735_v13  ;;  %v752_v21 = vmax.f32 %v706_v9, %v737_v7  ;;  %v3617_v59 = vld [vmem:[%s4757_s7 + $0x170] ss:$8 sps:$4 sm:$0xff]   ;;  %v3620_v0 = vld [vmem:[%s4757_s7 + $0x180] ss:$8 sps:$4 sm:$0xff]   ;;  %v3628_v13 = vld [vmem:[%s4757_s7 + $0x1a4] ss:$8 sps:$4 sm:$0xff]  }
 0x214   : > { %v3326_v2 = vunpack.i.h.bf16 %v3324_v18  ;;  %v3325_v11 = vunpack.i.l.bf16 %v3324_v18  ;;  %v3342_v63 = vpack.i.bf16 %v754_v22, %v750_v23  ;;  %v3623_v7 = vld [vmem:[%s4757_s7 + $0x190] ss:$8 sps:$4 sm:$0xff]   ;;  %v1157_v18 = vsel %vm1155_vm11, 4294967295, %v3743_v17 }
 0x215   : > { %v3327_v55 = vpack.i.bf16 %v4091_v20, %v748_v19  ;;  %v3332_v61 = vpack.i.bf16 %v4082_v16, %v752_v21 }
 0x216   : > { %v736_v58 = vsel %vm429_vm0, %v3326_v2, %v3321_v57  ;;  %v733_v1 = vsel %vm429_vm0, %v3325_v11, %v3310_v48  ;;  %v3607_v48 = vld [vmem:[%s4757_s7 + $0x134] ss:$8 sps:$4 sm:$0xff]   ;;  %v3634_v2 = vld [vmem:[%s4757_s7 + $0x1c4] ss:$8 sps:$4 sm:$0x7f]   ;;  %v1158_v11 = vsel %vm1156_vm12, %v1157_v18, 0 }
 0x217   : > { %3328 = vrot.lane.b32.xlu0 %v3327_v55, %s4783_s15  ;;  %3333 = vrot.lane.b32.xlu1 %v3332_v61, %s4783_s15  ;;  %v747_v62 = vmax.f32 %v701_v14, %v733_v1  ;;  %v751_v6 = vmax.f32 %v705_v15, %v736_v58  ;;  %v3619_v57 = vld [vmem:[%s4757_s7 + $0x174] ss:$8 sps:$4 sm:$0xff]   ;;  %v1163_v55 = vand.u32 %v3634_v2, %v1158_v11 }
 0x219   : > { %v3337_v9 = vpack.i.bf16 %v751_v6, %v747_v62 }
 0x21b   : > { %3343 = vrot.lane.b32.xlu1 %v3342_v63, %s4783_s15  ;;  %3338 = vrot.lane.b32.xlu0 %v3337_v9, %s4783_s15  ;;  %s3748_s15 = smov 102  }
 0x289   : > { %v4111_v10 = vpop.permute.xlu0 %3328  ;;  %v4113_v12 = vpop.permute.xlu1 %3333 }
 0x28a   : > { %v3331_v24 = vunpack.i.h.bf16 %v4111_v10  ;;  %v3330_v25 = vunpack.i.l.bf16 %v4111_v10  ;;  %v3336_v4 = vunpack.i.h.bf16 %v4113_v12  ;;  %v3335_v14 = vunpack.i.l.bf16 %v4113_v12 }
 0x28c   : > { %v780_v5 = vsel %vm461_vm2, %v3330_v25, %v3331_v24  ;;  %v783_v15 = vsel %vm461_vm2, %v3335_v14, %v3336_v4 }
 0x28d   : > { %v4125_v26 = vpop.permute.xlu1 %3343  ;;  %v3339_v27 = vpop.permute.xlu0 %3338  ;;  %v794_v28 = vmax.f32 %v748_v19, %v780_v5  ;;  %v798_v29 = vmax.f32 %v752_v21, %v783_v15  ;;  %v3626_v19 = vld [vmem:[%s4757_s7 + $0x1a0] ss:$8 sps:$4 sm:$0xff]   ;;  %v3631_v21 = vld [vmem:[%s4757_s7 + $0x1b4] ss:$8 sps:$4 sm:$0xff]  }
 0x28e   : > { %v3346_v30 = vunpack.i.h.bf16 %v4125_v26  ;;  %v3345_v31 = vunpack.i.l.bf16 %v4125_v26  ;;  %v3341_v32 = vunpack.i.h.bf16 %v3339_v27  ;;  %v3340_v33 = vunpack.i.l.bf16 %v3339_v27  ;;  %v1395_v15 = vld [vmem:[%s4754_s4 + $0x8] sm:$0xff]  ;;  %v1396_v26 = vld [vmem:[%s4754_s4 + $0x10] sm:$0xff]  ;;  %v1397_v27 = vld [vmem:[%s4754_s4 + $0x18] sm:$0xff] }
 0x28f   : > { %v802_v34 = vpack.c.bf16 %v798_v29, %v794_v28 }
 0x290   : > { %v800_v35 = vmax.f32 %v754_v22, %v3346_v30  ;;  %v796_v36 = vmax.f32 %v750_v23, %v3345_v31  ;;  %v782_v37 = vsel %vm461_vm2, %v3341_v32, %v3335_v14  ;;  %v779_v38 = vsel %vm461_vm2, %v3340_v33, %v3330_v25  ;;  %v3629_v22 = vld [vmem:[%s4757_s7 + $0x1b0] ss:$8 sps:$4 sm:$0xff]   ;;  %v3632_v23 = vld [vmem:[%s4757_s7 + $0x1c0] ss:$8 sps:$4 sm:$0x7f]  }
 0x291   : > { %1197 = vmatprep.mubr.bf16.mxu0 %v802_v34  ;;  %v797_v39 = vmax.f32 %v751_v6, %v782_v37  ;;  %v793_v40 = vmax.f32 %v747_v62, %v779_v38  ;;  %v781_v61 = vsel %vm461_vm2, %v3331_v24, %v3345_v31  ;;  %v784_v58 = vsel %vm461_vm2, %v3336_v4, %v3346_v30 }
 0x292   : > { %v804_v44 = vpack.c.bf16 %v800_v35, %v796_v36  ;;  %v1160_v1 = vand.u32 %v3632_v23, %v1158_v11  ;;  %v795_v62 = vmax.f32 %v4091_v20, %v781_v61  ;;  %v799_v6 = vmax.f32 %v4082_v16, %v784_v58  ;;  %v3635_v16 = vld [vmem:[%s4753_s3 + $0x4] ss:$8 sps:$4 sm:$0xff]  }
 0x293   : > { %v801_v42 = vpack.c.bf16 %v797_v39, %v793_v40  ;;  %3034 = vmatprep.mubr.msk.bf16.mxu1 %vm1436_vm13, %v3635_v16  ;;  %v1394_v20 = vld [vmem:[%s4754_s4] sm:$0xff]  ;;  %vm1350_vm2 = vcmask 842752  }
 0x294   : > { %v803_v63 = vpack.c.bf16 %v799_v6, %v795_v62 }
 0x295   : > { %1198 = vmatmul.mubr.bf16.vlgmr.msra.gmra.mrb[4].mxu0 %v801_v42 }
 0x296   : > { %1209 = vmatpush1.bf16.msra.mxu0 %v3596_v41  ;;  %3029 = vmatprep.mubr.msk.bf16.mxu0 %vm1151_vm10, %v804_v44 }
 0x297   : > { %1210 = vmatprep.subr.bf16.mxu0 %v3601_v43 }
 0x29a   : > { %1211 = vmatpush1.bf16.msra.mxu0 %v3599_v45 }
 0x29b   : > { %1212 = vmatprep.subr.bf16.mxu0 %v3604_v46 }
 0x29e   : > { %1213 = vmatpush1.bf16.msra.mxu0 %v3602_v47 }
 0x29f   : > { %1214 = vmatprep.subr.bf16.mxu0 %v3607_v48 }
 0x2a2   : > { %1215 = vmatpush1.bf16.msra.mxu0 %v3605_v49 }
 0x2a3   : > { %1216 = vmatprep.subr.bf16.mxu0 %v3610_v50 }
 0x2a6   : > { %1217 = vmatpush1.bf16.msra.mxu0 %v3608_v51 }
 0x2a7   : > { %1218 = vmatprep.subr.bf16.mxu0 %v3613_v52 }
 0x2aa   : > { %1219 = vmatpush1.bf16.msra.mxu0 %v3611_v53 }
 0x2ab   : > { %1220 = vmatprep.subr.bf16.mxu0 %v3616_v54 }
 0x2ae   : > { %1221 = vmatpush1.bf16.msra.mxu0 %v3614_v56 }
 0x2af   : > { %1222 = vmatprep.subr.bf16.mxu0 %v3619_v57 }
 0x2b2   : > { %1223 = vmatpush1.bf16.msra.mxu0 %v3617_v59 }
 0x2b3   : > { %1224 = vmatprep.subr.bf16.mxu0 %v3622_v60 }
 0x2b6   : > { %1225 = vmatpush1.bf16.msra.mxu0 %v3620_v0 }
 0x2b7   : > { %1226 = vmatprep.subr.bf16.mxu0 %v3625_v3 }
 0x2ba   : > { %1227 = vmatpush1.bf16.msra.mxu0 %v3623_v7 }
 0x2bb   : > { %1228 = vmatprep.subr.bf16.mxu0 %v3628_v13 }
 0x2be   : > { %1229 = vmatpush1.bf16.msra.mxu0 %v3626_v19 }
 0x2bf   : > { %1230 = vmatprep.subr.bf16.mxu0 %v3631_v21 }
 0x2c2   : > { %1231 = vmatpush1.bf16.msra.mxu0 %v3629_v22 }
 0x2c3   : > { %1232 = vmatprep.subr.bf16.mxu0 %v1163_v55 }
 0x2c6   : > { %1233 = vmatpush1.bf16.msra.mxu0 %v1160_v1 }
 0x2c9   : > { %1241 = vmatmul.mubr.bf16.vlgmr.msra.gmra.mrb[4].mxu0 %v803_v63 }
 0x2ca   : > { %2430 = vmatprep.mubr.bf16.mxu0 %v3741_v8 }
 0x39c   : > { %v1242_v9 = vpop.f32.mrb[4].mxu0 }
 0x39d   : > { %v1244_v10 = vpop.f32.mrb[5].mxu0 }
 0x39e   : > { %v1246_v24 = vpop.f32.mrb[6].mxu0  ;;  %v3347_v25 = vpack.i.bf16 %v1244_v10, %v1242_v9 }
 0x39f   : > { %v1248_v14 = vpop.f32.mrb[7].mxu0  ;;  %v1372_v12 = vpack.c.bf16 %v1246_v24, %v1242_v9 }
 0x3a0   : > { %3348 = vrot.lane.b32.xlu0 %v3347_v25, %s4784_s17  ;;  %v3387_v4 = vpack.i.bf16 %v1248_v14, %v1246_v24  ;;  %v1373_v5 = vpack.c.bf16 %v1248_v14, %v1244_v10 }
 0x3a2   : > { %3388 = vrot.lane.b32.xlu1 %v3387_v4, %s4784_s17  ;;  %1443 = vmatprep.subr.bf16.mxu1 %v1373_v5 }
 0x3a3   : > { %1444 = vmatpush1.bf16.msra.mxu1 %v1372_v12 }
 0x3a4   : > { %3353 = vrot.lane.b32.xlu0 %v3347_v25, %s4785_s0 }
 0x3a6   : > { %3393 = vrot.lane.b32.xlu1 %v3387_v4, %s4785_s0 }
 0x3a8   : > { %3358 = vrot.lane.b32.xlu0 %v3347_v25, %s4771_s26 }
 0x3aa   : > { %3398 = vrot.lane.b32.xlu1 %v3387_v4, %s4771_s26  ;;  %s3753_s26 = smov 121  }
 0x3ac   : > { %3363 = vrot.lane.b32.xlu0 %v3347_v25, %s3745_s29 }
 0x3ae   : > { %3403 = vrot.lane.b32.xlu1 %v3387_v4, %s3745_s29  ;;  %s3750_s29 = smov 119  }
 0x3b0   : > { %3368 = vrot.lane.b32.xlu0 %v3347_v25, %s4773_s16 }
 0x3b2   : > { %3408 = vrot.lane.b32.xlu1 %v3387_v4, %s4773_s16 }
 0x3b4   : > { %3373 = vrot.lane.b32.xlu0 %v3347_v25, %s4786_s20 }
 0x3b6   : > { %3413 = vrot.lane.b32.xlu1 %v3387_v4, %s4786_s20  ;;  %s4788_s20 = smov 114  }
 0x3b8   : > { %3378 = vrot.lane.b32.xlu0 %v3347_v25, %s3747_s19 }
 0x3ba   : > { %3418 = vrot.lane.b32.xlu1 %v3387_v4, %s3747_s19  ;;  %s4787_s19 = smov 116  }
 0x3bc   : > { %3383 = vrot.lane.b32.xlu0 %v3347_v25, %s3748_s15 }
 0x3be   : > { %3423 = vrot.lane.b32.xlu1 %v3387_v4, %s3748_s15  ;;  %s3749_s15 = smov 120  }
 0x3c0   : > { %1400 = vperm.xlu0 %3306, %v1394_v20  }
 0x3c2   : > { %1405 = vperm.xlu1 %3305, %v1395_v15  }
 0x3c4   : > { %1410 = vperm.xlu0 %3306, %v1396_v26  }
 0x3c6   : > { %1415 = vperm.xlu1 %3305, %v1397_v27  }
 0x412   : > { %v3349_v28 = vpop.permute.xlu0 %3348 }
 0x413   : > { %v3351_v29 = vunpack.i.h.bf16 %v3349_v28  ;;  %v3350_v30 = vunpack.i.l.bf16 %v3349_v28 }
 0x414   : > { %v3389_v31 = vpop.permute.xlu1 %3388 }
 0x415   : > { %v3391_v32 = vunpack.i.h.bf16 %v3389_v31  ;;  %v3390_v33 = vunpack.i.l.bf16 %v3389_v31  ;;  %v1263_v34 = vsel %vm429_vm0, %v3350_v30, %v3351_v29 }
 0x416   : > { %v3354_v35 = vpop.permute.xlu0 %3353 }
 0x417   : > { %v1375_v36 = vpack.c.bf16 %v3391_v32, %v3351_v29  ;;  %v1264_v37 = vsel %vm429_vm0, %v3390_v33, %v3391_v32  ;;  %v3356_v38 = vunpack.i.h.bf16 %v3354_v35  ;;  %v3355_v39 = vunpack.i.l.bf16 %v3354_v35 }
 0x418   : > { %v1374_v40 = vpack.c.bf16 %v1264_v37, %v1263_v34  ;;  %v3394_v41 = vpop.permute.xlu1 %3393 }
 0x419   : > { %v3396_v42 = vunpack.i.h.bf16 %v3394_v41  ;;  %v3395_v43 = vunpack.i.l.bf16 %v3394_v41  ;;  %1445 = vmatprep.subr.bf16.mxu1 %v1375_v36  ;;  %v1277_v44 = vsel %vm445_vm1, %v3355_v39, %v3356_v38 }
 0x41a   : > { %v3359_v45 = vpop.permute.xlu0 %3358  ;;  %1446 = vmatpush1.bf16.msra.mxu1 %v1374_v40 }
 0x41b   : > { %v1377_v46 = vpack.c.bf16 %v3396_v42, %v3356_v38  ;;  %v1278_v47 = vsel %vm445_vm1, %v3395_v43, %v3396_v42  ;;  %v3361_v48 = vunpack.i.h.bf16 %v3359_v45  ;;  %v3360_v49 = vunpack.i.l.bf16 %v3359_v45 }
 0x41c   : > { %v1376_v50 = vpack.c.bf16 %v1278_v47, %v1277_v44  ;;  %v3399_v51 = vpop.permute.xlu1 %3398  ;;  %vm1321_vm1 = vcmask 932864   ;;  %v3638_v47 = vld [vmem:[%s4753_s3 + $0x14] ss:$8 sps:$4 sm:$0xff]  }
 0x41d   : > { %v3401_v52 = vunpack.i.h.bf16 %v3399_v51  ;;  %v3400_v53 = vunpack.i.l.bf16 %v3399_v51  ;;  %1447 = vmatprep.subr.bf16.mxu1 %v1377_v46  ;;  %v1292_v54 = vsel %vm1291_vm14, %v3360_v49, %v3361_v48  ;;  %v3637_v46 = vld [vmem:[%s4753_s3] ss:$8 sps:$4 sm:$0xff]  }
 0x41e   : > { %v3364_v56 = vpop.permute.xlu0 %3363  ;;  %1448 = vmatpush1.bf16.msra.mxu1 %v1376_v50 }
 0x41f   : > { %v1379_v57 = vpack.c.bf16 %v3401_v52, %v3361_v48  ;;  %v1293_v59 = vsel %vm1291_vm14, %v3400_v53, %v3401_v52  ;;  %v3366_v60 = vunpack.i.h.bf16 %v3364_v56  ;;  %v3365_v0 = vunpack.i.l.bf16 %v3364_v56  ;;  %v3640_v48 = vld [vmem:[%s4753_s3 + $0x10] ss:$8 sps:$4 sm:$0xff]  }
 0x420   : > { %v1378_v3 = vpack.c.bf16 %v1293_v59, %v1292_v54  ;;  %v3404_v7 = vpop.permute.xlu1 %3403 }
 0x421   : > { %v3406_v13 = vunpack.i.h.bf16 %v3404_v7  ;;  %v3405_v18 = vunpack.i.l.bf16 %v3404_v7  ;;  %1449 = vmatprep.subr.bf16.mxu1 %v1379_v57  ;;  %v1307_v19 = vsel %vm1306_vm15, %v3365_v0, %v3366_v60 }
 0x422   : > { %v3369_v21 = vpop.permute.xlu0 %3368  ;;  %1450 = vmatpush1.bf16.msra.mxu1 %v1378_v3 }
 0x423   : > { %v1381_v2 = vpack.c.bf16 %v3406_v13, %v3366_v60  ;;  %v1308_v11 = vsel %vm1306_vm15, %v3405_v18, %v3406_v13  ;;  %v3371_v22 = vunpack.i.h.bf16 %v3369_v21  ;;  %v3370_v23 = vunpack.i.l.bf16 %v3369_v21 }
 0x424   : > { %v1380_v55 = vpack.c.bf16 %v1308_v11, %v1307_v19  ;;  %v3409_v61 = vpop.permute.xlu1 %3408 }
 0x425   : > { %v3411_v58 = vunpack.i.h.bf16 %v3409_v61  ;;  %v3410_v1 = vunpack.i.l.bf16 %v3409_v61  ;;  %1451 = vmatprep.subr.bf16.mxu1 %v1381_v2  ;;  %v1322_v62 = vsel %vm1321_vm1, %v3370_v23, %v3371_v22 }
 0x426   : > { %v3374_v6 = vpop.permute.xlu0 %3373  ;;  %1452 = vmatpush1.bf16.msra.mxu1 %v1380_v55 }
 0x427   : > { %v1383_v63 = vpack.c.bf16 %v3411_v58, %v3371_v22  ;;  %v1323_v9 = vsel %vm1321_vm1, %v3410_v1, %v3411_v58  ;;  %v3376_v10 = vunpack.i.h.bf16 %v3374_v6  ;;  %v3375_v24 = vunpack.i.l.bf16 %v3374_v6 }
 0x428   : > { %v1382_v25 = vpack.c.bf16 %v1323_v9, %v1322_v62  ;;  %v3414_v14 = vpop.permute.xlu1 %3413  ;;  %v3641_v9 = vld [vmem:[%s4758_s8] sm:$0xff]  }
 0x429   : > { %v3416_v12 = vunpack.i.h.bf16 %v3414_v14  ;;  %v3415_v4 = vunpack.i.l.bf16 %v3414_v14  ;;  %1453 = vmatprep.subr.bf16.mxu1 %v1383_v63  ;;  %v1336_v5 = vsel %vm493_vm4, %v3375_v24, %v3376_v10  ;;  %v3642_v14 = vld [vmem:[%s4758_s8 + $0x8] sm:$0xff]  }
 0x42a   : > { %v3379_v16 = vpop.permute.xlu0 %3378  ;;  %1454 = vmatpush1.bf16.msra.mxu1 %v1382_v25 }
 0x42b   : > { %v1385_v20 = vpack.c.bf16 %v3416_v12, %v3376_v10  ;;  %v1337_v15 = vsel %vm493_vm4, %v3415_v4, %v3416_v12  ;;  %v3381_v26 = vunpack.i.h.bf16 %v3379_v16  ;;  %v3380_v27 = vunpack.i.l.bf16 %v3379_v16  ;;  %v3643_v4 = vld [vmem:[%s4758_s8 + $0x10] sm:$0xff]   ;;  %v3645_v16 = vld [vmem:[%s4758_s8 + $0x20] sm:$0xff]  }
 0x42c   : > { %v1384_v28 = vpack.c.bf16 %v1337_v15, %v1336_v5  ;;  %v3419_v29 = vpop.permute.xlu1 %3418  ;;  %v3644_v5 = vld [vmem:[%s4758_s8 + $0x18] sm:$0xff]   ;;  %v3647_v15 = vld [vmem:[%s4758_s8 + $0x30] sm:$0xff]   ;;  %vm1671_vm4 = vcmask 1040384  }
 0x42d   : > { %v3421_v30 = vunpack.i.h.bf16 %v3419_v29  ;;  %v3420_v31 = vunpack.i.l.bf16 %v3419_v29  ;;  %1455 = vmatprep.subr.bf16.mxu1 %v1385_v20  ;;  %v1351_v32 = vsel %vm1350_vm2, %v3380_v27, %v3381_v26  ;;  %v3646_v20 = vld [vmem:[%s4758_s8 + $0x28] sm:$0xff]   ;;  %v3648_v27 = vld [vmem:[%s4758_s8 + $0x38] sm:$0xff]  }
 0x42e   : > { %v3384_v33 = vpop.permute.xlu0 %3383  ;;  %1456 = vmatpush1.bf16.msra.mxu1 %v1384_v28 }
 0x42f   : > { %v1387_v34 = vpack.c.bf16 %v3421_v30, %v3381_v26  ;;  %v1352_v35 = vsel %vm1350_vm2, %v3420_v31, %v3421_v30  ;;  %v3386_v36 = vunpack.i.h.bf16 %v3384_v33  ;;  %v3385_v37 = vunpack.i.l.bf16 %v3384_v33  ;;  %v3649_v31 = vld [vmem:[%s4758_s8 + $0x40] ss:$0 sps:$4 sm:$0x33]  }
 0x430   : > { %v1386_v38 = vpack.c.bf16 %v1352_v35, %v1351_v32  ;;  %v3424_v39 = vpop.permute.xlu1 %3423  ;;  %v1673_v26 = vsel %vm1671_vm4, 4294967295, %v3743_v17 }
 0x431   : > { %v3426_v40 = vunpack.i.h.bf16 %v3424_v39  ;;  %v3425_v41 = vunpack.i.l.bf16 %v3424_v39  ;;  %1457 = vmatprep.subr.bf16.mxu1 %v1387_v34  ;;  %v1366_v42 = vsel %vm1365_vm3, %v3385_v37, %v3386_v36  ;;  %v1674_v33 = vsel %vm1672_vm5, %v1673_v26, 0 }
 0x432   : > { %1458 = vmatpush1.bf16.msra.mxu1 %v1386_v38  ;;  %v1676_v38 = vand.u32 %v3649_v31, %v1674_v33 }
 0x433   : > { %v1389_v43 = vpack.c.bf16 %v3426_v40, %v3386_v36  ;;  %v1367_v44 = vsel %vm1365_vm3, %v3425_v41, %v3426_v40 }
 0x434   : > { %v1388_v45 = vpack.c.bf16 %v1367_v44, %v1366_v42 }
 0x435   : > { %1459 = vmatprep.subr.bf16.mxu1 %v1389_v43 }
 0x436   : > { %1460 = vmatpush1.bf16.msra.mxu1 %v1388_v45 }
 0x437   : > { %1678 = vmatprep.subr.bf16.mxu1 %v3741_v8 }
 0x439   : > { %1476 = vmatmul.mubr.bf16.vlgmr.msra.gmra.mrb[4].mxu1 %v3637_v46 }
 0x43a   : > { %3035 = vmatprep.mubr.msk.bf16.mxu1 %vm1436_vm13, %v3638_v47  ;;  %1679 = vmatpush1.bf16.msra.mxu1 %v3641_v9 }
 0x43b   : > { %1680 = vmatprep.subr.bf16.mxu1 %v3741_v8 }
 0x43e   : > { %1681 = vmatpush1.bf16.msra.mxu1 %v3642_v14 }
 0x43f   : > { %v1401_v49 = vpop.permute.xlu0 %1400  ;;  %1682 = vmatprep.subr.bf16.mxu1 %v3741_v8 }
 0x441   : > { %1486 = vmatmul.mubr.bf16.gmra.mrb[8].mxu1 %v3640_v48  ;;  %v1406_v53 = vpop.permute.xlu1 %1405 }
 0x442   : > { %1683 = vmatpush1.bf16.msra.mxu1 %v3643_v4 }
 0x443   : > { %v1411_v19 = vpop.permute.xlu0 %1410  ;;  %1684 = vmatprep.subr.bf16.mxu1 %v3741_v8 }
 0x445   : > { %v1416_v23 = vpop.permute.xlu1 %1415 }
 0x446   : > { %1685 = vmatpush1.bf16.msra.mxu1 %v3644_v5 }
 0x447   : > { %1686 = vmatprep.subr.bf16.mxu1 %v3741_v8 }
 0x44a   : > { %1687 = vmatpush1.bf16.msra.mxu1 %v3645_v16 }
 0x44b   : > { %1688 = vmatprep.subr.bf16.mxu1 %v3741_v8 }
 0x44e   : > { %1689 = vmatpush1.bf16.msra.mxu1 %v3646_v20 }
 0x44f   : > { %1690 = vmatprep.subr.bf16.mxu1 %v3741_v8 }
 0x452   : > { %1691 = vmatpush1.bf16.msra.mxu1 %v3647_v15 }
 0x453   : > { %1692 = vmatprep.subr.bf16.mxu1 %v3741_v8 }
 0x456   : > { %1693 = vmatpush1.bf16.msra.mxu1 %v3648_v27 }
 0x457   : > { %1694 = vmatprep.subr.bf16.mxu1 %v3741_v8 }
 0x45a   : > { %1695 = vmatpush1.bf16.msra.mxu1 %v1676_v38 }
 0x50c   : > { %v1477_v50 = vpop.f32.mrb[4].mxu1 }
 0x50d   : > { %v4275_v51 = vadd.f32 %v1477_v50, %v1401_v49  ;;  %v1479_v52 = vpop.f32.mrb[5].mxu1 }
 0x50e   : > { %v4277_v54 = vadd.f32 %v1479_v52, %v1401_v49  ;;  %v1481_v56 = vpop.f32.mrb[6].mxu1 }
 0x50f   : > { %v1496_v57 = vmax.f32 %v4275_v51, 0.0  ;;  %v4280_v59 = vadd.f32 %v1481_v56, %v1406_v53  ;;  %v1483_v60 = vpop.f32.mrb[7].mxu1 }
 0x510   : > { %v1497_v0 = vmax.f32 %v4277_v54, 0.0  ;;  %v4283_v3 = vadd.f32 %v1483_v60, %v1406_v53 }
 0x511   : > { %v1498_v7 = vmax.f32 %v4280_v59, 0.0 }
 0x512   : > { %v3427_v13 = vpack.i.bf16 %v1497_v0, %v1496_v57  ;;  %v1499_v18 = vmax.f32 %v4283_v3, 0.0 }
 0x514   : > { %v3432_v21 = vpack.i.bf16 %v1499_v18, %v1498_v7  ;;  %v1487_v2 = vpop.f32.mrb[8].mxu1  ;;  %3428 = vrot.lane.b32.xlu0 %v3427_v13, %s4784_s17 }
 0x515   : > { %v4292_v11 = vadd.f32 %v1487_v2, %v1411_v19  ;;  %v1489_v22 = vpop.f32.mrb[9].mxu1 }
 0x516   : > { %v4294_v55 = vadd.f32 %v1489_v22, %v1411_v19  ;;  %v1491_v61 = vpop.f32.mrb[10].mxu1  ;;  %3433 = vrot.lane.b32.xlu1 %v3432_v21, %s4784_s17 }
 0x517   : > { %v1500_v58 = vmax.f32 %v4292_v11, 0.0  ;;  %v4298_v1 = vadd.f32 %v1491_v61, %v1416_v23  ;;  %v1493_v62 = vpop.f32.mrb[11].mxu1 }
 0x518   : > { %v1501_v6 = vmax.f32 %v4294_v55, 0.0  ;;  %v4301_v63 = vadd.f32 %v1493_v62, %v1416_v23 }
 0x519   : > { %v1502_v10 = vmax.f32 %v4298_v1, 0.0 }
 0x51a   : > { %v3437_v24 = vpack.i.bf16 %v1501_v6, %v1500_v58  ;;  %v1503_v25 = vmax.f32 %v4301_v63, 0.0 }
 0x51c   : > { %v3442_v12 = vpack.i.bf16 %v1503_v25, %v1502_v10  ;;  %3438 = vrot.lane.b32.xlu0 %v3437_v24, %s4784_s17 }
 0x51e   : > { %3443 = vrot.lane.b32.xlu1 %v3442_v12, %s4784_s17 }
 0x586   : > { %v3429_v28 = vpop.permute.xlu0 %3428 }
 0x587   : > { %v3431_v29 = vunpack.i.h.bf16 %v3429_v28  ;;  %v3430_v30 = vunpack.i.l.bf16 %v3429_v28 }
 0x588   : > { %v3434_v32 = vpop.permute.xlu1 %3433 }
 0x589   : > { %v1541_v34 = vmax.f32 %v1497_v0, %v3431_v29  ;;  %v1528_v17 = vsel %vm429_vm0, %v3430_v30, %v3431_v29  ;;  %v3436_v35 = vunpack.i.h.bf16 %v3434_v32  ;;  %v3435_v36 = vunpack.i.l.bf16 %v3434_v32 }
 0x58a   : > { %v1540_v37 = vmax.f32 %v1496_v57, %v1528_v17 }
 0x58b   : > { %v1543_v39 = vmax.f32 %v1499_v18, %v3436_v35  ;;  %v1529_v40 = vsel %vm429_vm0, %v3435_v36, %v3436_v35  ;;  %v3652_v35 = vld [vmem:[%s4755_s5 + $0x4] ss:$12 sps:$4 sm:$0xff]  }
 0x58c   : > { %v3447_v41 = vpack.i.bf16 %v1541_v34, %v1540_v37  ;;  %v1542_v42 = vmax.f32 %v1498_v7, %v1529_v40  ;;  %v1849_v36 = vld [vmem:[%s4756_s6] sm:$0xff] }
 0x58e   : > { %v3439_v43 = vpop.permute.xlu0 %3438  ;;  %3448 = vrot.lane.b32.xlu0 %v3447_v41, %s4787_s19  ;;  %v3452_v44 = vpack.i.bf16 %v1543_v39, %v1542_v42 }
 0x58f   : > { %v3441_v45 = vunpack.i.h.bf16 %v3439_v43  ;;  %v3440_v46 = vunpack.i.l.bf16 %v3439_v43 }
 0x590   : > { %v3444_v47 = vpop.permute.xlu1 %3443  ;;  %3453 = vrot.lane.b32.xlu1 %v3452_v44, %s4787_s19 }
 0x591   : > { %v1545_v48 = vmax.f32 %v1501_v6, %v3441_v45  ;;  %v1530_v49 = vsel %vm429_vm0, %v3440_v46, %v3441_v45  ;;  %v3446_v50 = vunpack.i.h.bf16 %v3444_v47  ;;  %v3445_v51 = vunpack.i.l.bf16 %v3444_v47 }
 0x592   : > { %v1544_v52 = vmax.f32 %v1500_v58, %v1530_v49 }
 0x593   : > { %v1547_v53 = vmax.f32 %v1503_v25, %v3446_v50  ;;  %v1531_v54 = vsel %vm429_vm0, %v3445_v51, %v3446_v50  ;;  %vm1664_vm0 = vcmask 23552  }
 0x594   : > { %v3457_v56 = vpack.i.bf16 %v1545_v48, %v1544_v52  ;;  %v1546_v57 = vmax.f32 %v1502_v10, %v1531_v54 }
 0x596   : > { %3458 = vrot.lane.b32.xlu0 %v3457_v56, %s4787_s19  ;;  %v3462_v59 = vpack.i.bf16 %v1547_v53, %v1546_v57 }
 0x598   : > { %3463 = vrot.lane.b32.xlu1 %v3462_v59, %s4787_s19 }
 0x600   : > { %v3449_v60 = vpop.permute.xlu0 %3448 }
 0x601   : > { %v3451_v0 = vunpack.i.h.bf16 %v3449_v60  ;;  %v3450_v3 = vunpack.i.l.bf16 %v3449_v60 }
 0x602   : > { %v3454_v7 = vpop.permute.xlu1 %3453 }
 0x603   : > { %v1572_v13 = vsel %vm1291_vm14, %v3450_v3, %v3451_v0  ;;  %v3456_v18 = vunpack.i.h.bf16 %v3454_v7  ;;  %v3455_v19 = vunpack.i.l.bf16 %v3454_v7  ;;  %v1585_v21 = vmax.f32 %v1541_v34, %v3451_v0 }
 0x604   : > { %v1584_v22 = vmax.f32 %v1540_v37, %v1572_v13  ;;  %v1850_v37 = vld [vmem:[%s4756_s6 + $0x8] sm:$0xff] }
 0x605   : > { %v1587_v2 = vmax.f32 %v1543_v39, %v3456_v18  ;;  %v1573_v11 = vsel %vm1291_vm14, %v3455_v19, %v3456_v18 }
 0x606   : > { %v1586_v23 = vmax.f32 %v1542_v42, %v1573_v11 }
 0x607   : > { %v1593_v55 = vpack.c.bf16 %v1587_v2, %v1585_v21 }
 0x608   : > { %v1592_v61 = vpack.c.bf16 %v1586_v23, %v1584_v22  ;;  %v3459_v58 = vpop.permute.xlu0 %3458 }
 0x609   : > { %v3461_v1 = vunpack.i.h.bf16 %v3459_v58  ;;  %v3460_v62 = vunpack.i.l.bf16 %v3459_v58  ;;  %3045 = vmatprep.mubr.msk.bf16.mxu1 %vm1664_vm0, %v1593_v55 }
 0x60a   : > { %v3464_v6 = vpop.permute.xlu1 %3463  ;;  %1711 = vmatmul.mubr.bf16.vlgmr.msra.gmra.mrb[12].mxu1 %v1592_v61 }
 0x60b   : > { %v1574_v63 = vsel %vm1291_vm14, %v3460_v62, %v3461_v1  ;;  %v3466_v9 = vunpack.i.h.bf16 %v3464_v6  ;;  %v3465_v10 = vunpack.i.l.bf16 %v3464_v6  ;;  %v1589_v24 = vmax.f32 %v1545_v48, %v3461_v1 }
 0x60c   : > { %v1588_v12 = vmax.f32 %v1544_v52, %v1574_v63 }
 0x60d   : > { %v1591_v25 = vmax.f32 %v1547_v53, %v3466_v9  ;;  %v1575_v14 = vsel %vm1291_vm14, %v3465_v10, %v3466_v9 }
 0x60e   : > { %v1590_v4 = vmax.f32 %v1546_v57, %v1575_v14 }
 0x60f   : > { %v1595_v5 = vpack.c.bf16 %v1591_v25, %v1589_v24 }
 0x610   : > { %v1594_v16 = vpack.c.bf16 %v1590_v4, %v1588_v12 }
 0x611   : > { %3046 = vmatprep.mubr.msk.bf16.mxu1 %vm1664_vm0, %v1595_v5 }
 0x612   : > { %1719 = vmatmul.mubr.bf16.gmra.mrb[16].mxu1 %v1594_v16 }
 0x613   : > { %1912 = vmatprep.mubr.bf16.mxu1 %v3652_v35  ;;  %v3650_v35 = vld [vmem:[%s4755_s5] ss:$12 sps:$4 sm:$0xff]  }
 0x6dd   : > { %v1712_v20 = vpop.f32.mrb[12].mxu1 }
 0x6de   : > { %v1714_v15 = vpop.f32.mrb[13].mxu1 }
 0x6df   : > { %v1715_v26 = vpop.f32.mrb[14].mxu1 }
 0x6e0   : > { %v1717_v27 = vpop.f32.mrb[15].mxu1  ;;  %v3467_v28 = vpack.i.bf16 %v1715_v26, %v1712_v20  ;;  %v1827_v29 = vpack.c.bf16 %v1715_v26, %v1712_v20 }
 0x6e2   : > { %3468 = vrot.lane.b32.xlu0 %v3467_v28, %s3749_s15 }
 0x6e5   : > { %v1720_v30 = vpop.f32.mrb[16].mxu1 }
 0x6e6   : > { %3478 = vrot.lane.b32.xlu0 %v3467_v28, %s3750_s29  ;;  %v1722_v31 = vpop.f32.mrb[17].mxu1 }
 0x6e7   : > { %v1723_v32 = vpop.f32.mrb[18].mxu1 }
 0x6e8   : > { %v1725_v33 = vpop.f32.mrb[19].mxu1  ;;  %v3487_v34 = vpack.i.bf16 %v1723_v32, %v1720_v30  ;;  %v1828_v17 = vpack.c.bf16 %v1723_v32, %v1720_v30 }
 0x6ea   : > { %3488 = vrot.lane.b32.xlu0 %v3487_v34, %s3750_s29  ;;  %3473 = vrot.lane.b32.xlu1 %v3487_v34, %s3749_s15 }
 0x6ee   : > { %3493 = vrot.lane.b32.xlu0 %v3467_v28, %s4788_s20  ;;  %3483 = vrot.lane.b32.xlu1 %v3467_v28, %s4784_s17 }
 0x6f2   : > { %3508 = vrot.lane.b32.xlu0 %v3487_v34, %s4788_s20  ;;  %3498 = vrot.lane.b32.xlu1 %v3487_v34, %s4784_s17  ;;  %s404_s20 = sand.u32 1, %s3724_s22  }
 0x6f3   : > { %s405_s18 = scalar_lea.vmem [#allocation2], %s404_s20  ;;  %s2894_s19 = scalar_lea.sflag [#allocation3], %s404_s20 }
 0x6f4   : > { %s2906_s1 = sshll.u32 %s405_s18, 4  ;;  %s4710_s1 = int_to_ptr.vmem [resolvable:$true] %s2906_s1 }
 0x6f5   : > { %s3670_s17 = scalar_lea.vmem %s4710_s1, 16 }
 0x6f6   : > { %3513 = vrot.lane.b32.xlu0 %v3467_v28, %s3751_s28  ;;  %3503 = vrot.lane.b32.xlu1 %v3467_v28, %s4785_s0  ;;  %p3671_p11 = scmp.ne.s32.totalorder %s4710_s1, %s3670_s17 }
 0x6f8   : > { %p3672_p12 = pnand %p3671_p11, %p3860_p5 }
 0x6fa   : > { %3528 = vrot.lane.b32.xlu0 %v3487_v34, %s3751_s28  ;;  %3518 = vrot.lane.b32.xlu1 %v3487_v34, %s4785_s0  ;;  %s3123_s28 = sshll.u32 %s3843_s25, 4  ;;  %p3673_p13 = pneg %p3672_p12 }
 0x6fb   : > { %s4708_s16 = scalar_lea.hbm %s4762_s12, %s3123_s28  ;;  %s3756_s25 = smov [#allocation2]  }
 0x6fc   : > { %s3674_s15 = sshll.u32 %s3756_s25, 4  ;;  %s3675_s15 = int_to_ptr.vmem [resolvable:$false] %s3674_s15 }
 0x6fd   : > { %s3676_s0 = scalar_lea.vmem %s3675_s15, 32  ;;  %p3677_p0 = scmp.lt.s32.totalorder %s4710_s1, %s3675_s15 }
 0x6fe   : > { %3538 = vrot.lane.b32.xlu0 %v3467_v28, %s3752_s2  ;;  %3523 = vrot.lane.b32.xlu1 %v3467_v28, %s3753_s26  ;;  %p3678_p1 = scmp.lt.s32.totalorder %s3676_s0, %s3670_s17 }
 0x700   : > { %p3679_p2 = por %p3678_p1, %p3677_p0 }
 0x702   : > { %1853 = vperm.xlu0 %3306, %v1849_v36   ;;  %3533 = vrot.lane.b32.xlu1 %v3487_v34, %s3753_s26  ;;  %v3754_v36 = vmov 0.0   ;;  %p3680_p3 = pnand %p3679_p2, %p3673_p13 }
 0x706   : > { %3543 = vrot.lane.b32.xlu1 %v3487_v34, %s3752_s2 }
 0x70a   : > { %1858 = vperm.xlu1 %3305, %v1850_v37  }
 0x754   : > { %v3469_v38 = vpop.permute.xlu0 %3468 }
 0x755   : > { %v3471_v39 = vunpack.i.h.bf16 %v3469_v38  ;;  %v3470_v40 = vunpack.i.l.bf16 %v3469_v38 }
 0x757   : > { %v1835_v41 = vpack.c.bf16 %v3471_v39, %v3470_v40 }
 0x758   : > { %v3479_v42 = vpop.permute.xlu0 %3478 }
 0x759   : > { %3126 = vmatprep.subr.bf16.mxu1 %v1835_v41  ;;  %v3481_v43 = vunpack.i.h.bf16 %v3479_v42  ;;  %v3480_v44 = vunpack.i.l.bf16 %v3479_v42  ;;  %v3653_v41 = vld [vmem:[%s4755_s5 + $0x8] ss:$12 sps:$4 sm:$0xff]   ;;  %v1965_v42 = vld [vmem:[%s4759_s9] sm:$0xff] }
 0x75a   : > { %3127 = vmatpush3.bf16.msra.mxu1 %v1827_v29 }
 0x75b   : > { %v1837_v50 = vpack.c.bf16 %v3481_v43, %v3480_v44  ;;  %v1973_v43 = vld [vmem:[%s4759_s9 + $0x40] sm:$0xff]  ;;  %v1966_v44 = vld [vmem:[%s4759_s9 + $0x8] sm:$0xff] }
 0x75c   : > { %v3489_v45 = vpop.permute.xlu0 %3488  ;;  %v3474_v46 = vpop.permute.xlu1 %3473 }
 0x75d   : > { %v3476_v47 = vunpack.i.h.bf16 %v3474_v46  ;;  %v3475_v48 = vunpack.i.l.bf16 %v3474_v46  ;;  %v3491_v53 = vunpack.i.h.bf16 %v3489_v45  ;;  %v3490_v54 = vunpack.i.l.bf16 %v3489_v45 }
 0x75e   : > { %v3051_v45 = vcombine.low %v1965_v42, %v1973_v43  ;;  %v3052_v46 = vcombine.high %v1965_v42, %v1973_v43 }
 0x75f   : > { %v1836_v49 = vpack.c.bf16 %v3476_v47, %v3475_v48  ;;  %v1838_v13 = vpack.c.bf16 %v3491_v53, %v3490_v54  ;;  %v1974_v47 = vld [vmem:[%s4759_s9 + $0x48] sm:$0xff] }
 0x760   : > { %v3494_v51 = vpop.permute.xlu0 %3493  ;;  %v3484_v52 = vpop.permute.xlu1 %3483  ;;  %v3053_v48 = vcombine.low %v1966_v44, %v1974_v47 }
 0x761   : > { %v3486_v56 = vunpack.i.h.bf16 %v3484_v52  ;;  %v3485_v57 = vunpack.i.l.bf16 %v3484_v52  ;;  %3128 = vmatprep.subr.bf16.mxu1 %v1836_v49  ;;  %v3496_v60 = vunpack.i.h.bf16 %v3494_v51  ;;  %v3495_v0 = vunpack.i.l.bf16 %v3494_v51  ;;  %v1989_v51 = vld [vmem:[%s4759_s9 + $0xc0] sm:$0xff]  ;;  %v1982_v52 = vld [vmem:[%s4759_s9 + $0x88] sm:$0xff] }
 0x762   : > { %3129 = vmatpush3.bf16.msra.mxu1 %v1828_v17  ;;  %v3054_v49 = vcombine.high %v1966_v44, %v1974_v47  ;;  %v1999_v47 = vld [vmem:[%s4759_s9 + $0x110] sm:$0xff] }
 0x763   : > { %v1829_v59 = vpack.c.bf16 %v3486_v56, %v3485_v57  ;;  %3130 = vmatprep.subr.bf16.mxu1 %v1837_v50  ;;  %v1839_v2 = vpack.c.bf16 %v3496_v60, %v3495_v0  ;;  %v1981_v50 = vld [vmem:[%s4759_s9 + $0x80] sm:$0xff]  ;;  %v1990_v56 = vld [vmem:[%s4759_s9 + $0xc8] sm:$0xff] }
 0x764   : > { %v3509_v3 = vpop.permute.xlu0 %3508  ;;  %v3499_v7 = vpop.permute.xlu1 %3498  ;;  %2398 = vmatprep.subr.bf16.mxu0 %v3054_v49  ;;  %v3067_v53 = vcombine.low %v1981_v50, %v1989_v51  ;;  %v3068_v54 = vcombine.high %v1981_v50, %v1989_v51  ;;  %v3069_v57 = vcombine.low %v1982_v52, %v1990_v56  ;;  %v1997_v60 = vld [vmem:[%s4759_s9 + $0x100] sm:$0xff]  ;;  %v2000_v49 = vld [vmem:[%s4759_s9 + $0x118] sm:$0xff]  ;;  %v2015_v51 = vld [vmem:[%s4759_s9 + $0x190] sm:$0x11] }
 0x765   : > { %v3501_v18 = vunpack.i.h.bf16 %v3499_v7  ;;  %v3500_v19 = vunpack.i.l.bf16 %v3499_v7  ;;  %v3511_v23 = vunpack.i.h.bf16 %v3509_v3  ;;  %v3510_v55 = vunpack.i.l.bf16 %v3509_v3  ;;  %2399 = vmatpush1.bf16.msra.mxu0 %v3053_v48  ;;  %v2005_v0 = vld [vmem:[%s4759_s9 + $0x140] sm:$0xff]  ;;  %v1998_v3 = vld [vmem:[%s4759_s9 + $0x108] sm:$0xff]  ;;  %v2007_v48 = vld [vmem:[%s4759_s9 + $0x150] sm:$0xff] }
 0x766   : > { %3131 = vmatpush3.bf16.msra.mxu1 %v1829_v59  ;;  %v3070_v59 = vcombine.high %v1982_v52, %v1990_v56  ;;  %v3084_v7 = vcombine.high %v1997_v60, %v2005_v0  ;;  %v2008_v50 = vld [vmem:[%s4759_s9 + $0x158] sm:$0xff]  ;;  %v3088_v56 = vcombine.high %v1999_v47, %v2007_v48 }
 0x767   : > { %v1830_v21 = vpack.c.bf16 %v3501_v18, %v3500_v19  ;;  %3132 = vmatprep.subr.bf16.mxu1 %v1838_v13  ;;  %v1840_v9 = vpack.c.bf16 %v3511_v23, %v3510_v55  ;;  %v2006_v13 = vld [vmem:[%s4759_s9 + $0x148] sm:$0xff]  ;;  %v4430_v18 = vsel %vm1671_vm4, 65535, %v3741_v8  ;;  %v3083_v19 = vcombine.low %v1997_v60, %v2005_v0  ;;  %v2016_v52 = vld [vmem:[%s4759_s9 + $0x198] sm:$0x11] }
 0x768   : > { %v3514_v11 = vpop.permute.xlu0 %3513  ;;  %v3504_v22 = vpop.permute.xlu1 %3503  ;;  %2400 = vmatprep.subr.bf16.mxu0 %v3070_v59  ;;  %v3104_v59 = vcombine.high %v2015_v51, %v2015_v51  ;;  %v3106_v60 = vcombine.high %v2016_v52, %v2016_v52  ;;  %v3087_v0 = vcombine.low %v1999_v47, %v2007_v48  ;;  %v1995_v47 = vld [vmem:[%s4759_s9 + $0xf0] sm:$0xff]  ;;  %v1988_v48 = vld [vmem:[%s4759_s9 + $0xb8] sm:$0xff] }
 0x769   : > { %v3506_v61 = vunpack.i.h.bf16 %v3504_v22  ;;  %v3505_v58 = vunpack.i.l.bf16 %v3504_v22  ;;  %v3516_v62 = vunpack.i.h.bf16 %v3514_v11  ;;  %v3515_v6 = vunpack.i.l.bf16 %v3514_v11  ;;  %2401 = vmatpush1.bf16.msra.mxu0 %v3069_v57  ;;  %v2013_v11 = vld [vmem:[%s4759_s9 + $0x180] sm:$0x11]  ;;  %v2014_v22 = vld [vmem:[%s4759_s9 + $0x188] sm:$0x11] }
 0x76a   : > { %3133 = vmatpush3.bf16.msra.mxu1 %v1830_v21  ;;  %v3085_v21 = vcombine.low %v1998_v3, %v2006_v13  ;;  %v3100_v23 = vcombine.high %v2013_v11, %v2013_v11  ;;  %v3102_v55 = vcombine.high %v2014_v22, %v2014_v22  ;;  %v3090_v57 = vcombine.high %v2000_v49, %v2008_v50 }
 0x76b   : > { %v1831_v1 = vpack.c.bf16 %v3506_v61, %v3505_v58  ;;  %3134 = vmatprep.subr.bf16.mxu1 %v1839_v2  ;;  %v1841_v12 = vpack.c.bf16 %v3516_v62, %v3515_v6  ;;  %v3086_v2 = vcombine.high %v1998_v3, %v2006_v13  ;;  %v3099_v61 = vcombine.low %v2013_v11, %v2013_v11  ;;  %v1977_v11 = vld [vmem:[%s4759_s9 + $0x60] sm:$0xff] }
 0x76c   : > { %v3519_v63 = vpop.permute.xlu1 %3518  ;;  %v3529_v25 = vpop.permute.xlu0 %3528  ;;  %v3101_v58 = vcombine.low %v2014_v22, %v2014_v22  ;;  %v2317_v62 = vand.u32 %v3102_v55, %v4430_v18  ;;  %v3089_v3 = vcombine.low %v2000_v49, %v2008_v50  ;;  %v3105_v13 = vcombine.low %v2016_v52, %v2016_v52  ;;  %v1970_v22 = vld [vmem:[%s4759_s9 + $0x28] sm:$0xff]  ;;  %v1996_v49 = vld [vmem:[%s4759_s9 + $0xf8] sm:$0xff] }
 0x76d   : > { %v3521_v10 = vunpack.i.h.bf16 %v3519_v63  ;;  %v3520_v24 = vunpack.i.l.bf16 %v3519_v63  ;;  %v3531_v5 = vunpack.i.h.bf16 %v3529_v25  ;;  %v3530_v16 = vunpack.i.l.bf16 %v3529_v25  ;;  %2402 = vmatprep.subr.bf16.mxu0 %v3086_v2  ;;  %v1969_v2 = vld [vmem:[%s4759_s9 + $0x20] sm:$0xff] }
 0x76e   : > { %3135 = vmatpush3.bf16.msra.mxu1 %v1831_v1  ;;  %2403 = vmatpush1.bf16.msra.mxu0 %v3085_v21  ;;  %v2311_v1 = vand.u32 %v3100_v23, %v4430_v18  ;;  %v2308_v6 = vand.u32 %v3099_v61, %v4430_v18  ;;  %v2314_v63 = vand.u32 %v3101_v58, %v4430_v18  ;;  %v1978_v23 = vld [vmem:[%s4759_s9 + $0x68] sm:$0xff] }
 0x76f   : > { %v1832_v14 = vpack.c.bf16 %v3521_v10, %v3520_v24  ;;  %3136 = vmatprep.subr.bf16.mxu1 %v1840_v9  ;;  %v1842_v28 = vpack.c.bf16 %v3531_v5, %v3530_v16  ;;  %v1967_v9 = vld [vmem:[%s4759_s9 + $0x10] sm:$0xff]  ;;  %v1968_v24 = vld [vmem:[%s4759_s9 + $0x18] sm:$0xff]  ;;  %2404 = vmatprep.subr.bf16.mxu0 %v2317_v62  ;;  %v2329_v21 = vand.u32 %v3106_v60, %v4430_v18  ;;  %v1985_v62 = vld [vmem:[%s4759_s9 + $0xa0] sm:$0xff] }
 0x770   : > { %v3524_v4 = vpop.permute.xlu1 %3523  ;;  %v3539_v29 = vpop.permute.xlu0 %3538  ;;  %v1975_v10 = vld [vmem:[%s4759_s9 + $0x50] sm:$0xff]  ;;  %v2326_v61 = vand.u32 %v3105_v13, %v4430_v18  ;;  %v3060_v58 = vcombine.high %v1969_v2, %v1977_v11 }
 0x771   : > { %v3526_v20 = vunpack.i.h.bf16 %v3524_v4  ;;  %v3525_v15 = vunpack.i.l.bf16 %v3524_v4  ;;  %v3541_v33 = vunpack.i.h.bf16 %v3539_v29  ;;  %v3540_v34 = vunpack.i.l.bf16 %v3539_v29  ;;  %v2019_v60 = vld [vmem:[%s4759_s9 + $0x1b0] sm:$0x11] }
 0x772   : > { %3137 = vmatpush3.bf16.msra.mxu1 %v1832_v14  ;;  %v3055_v25 = vcombine.low %v1967_v9, %v1975_v10  ;;  %v3056_v14 = vcombine.high %v1967_v9, %v1975_v10  ;;  %2405 = vmatpush1.bf16.msra.mxu0 %v2314_v63  ;;  %v1986_v63 = vld [vmem:[%s4759_s9 + $0xa8] sm:$0xff]  ;;  %v3059_v10 = vcombine.low %v1969_v2, %v1977_v11 }
 0x773   : > { %v1833_v26 = vpack.c.bf16 %v3526_v20, %v3525_v15  ;;  %3138 = vmatprep.subr.bf16.mxu1 %v1841_v12  ;;  %v1843_v37 = vpack.c.bf16 %v3541_v33, %v3540_v34  ;;  %v1976_v12 = vld [vmem:[%s4759_s9 + $0x58] sm:$0xff]  ;;  %v1994_v9 = vld [vmem:[%s4759_s9 + $0xe8] sm:$0xff] }
 0x774   : > { %v3534_v27 = vpop.permute.xlu1 %3533  ;;  %v3057_v4 = vcombine.low %v1968_v24, %v1976_v12  ;;  %v3058_v5 = vcombine.high %v1968_v24, %v1976_v12  ;;  %v3061_v24 = vcombine.low %v1970_v22, %v1978_v23  ;;  %v2001_v12 = vld [vmem:[%s4759_s9 + $0x120] sm:$0xff] }
 0x775   : > { %v3536_v30 = vunpack.i.h.bf16 %v3534_v27  ;;  %v3535_v31 = vunpack.i.l.bf16 %v3534_v27 }
 0x776   : > { %3139 = vmatpush3.bf16.msra.mxu1 %v1833_v26  ;;  %2484 = vmatprep.subr.bf16.mxu0 %v3058_v5  ;;  %v2002_v5 = vld [vmem:[%s4759_s9 + $0x128] sm:$0xff] }
 0x777   : > { %v1834_v32 = vpack.c.bf16 %v3536_v30, %v3535_v31  ;;  %3140 = vmatprep.subr.bf16.mxu1 %v1842_v28 }
 0x778   : > { %v3544_v17 = vpop.permute.xlu1 %3543 }
 0x779   : > { %v3546_v38 = vunpack.i.h.bf16 %v3544_v17  ;;  %v3545_v39 = vunpack.i.l.bf16 %v3544_v17 }
 0x77a   : > { %3141 = vmatpush3.bf16.msra.mxu1 %v1834_v32 }
 0x77b   : > { %3151 = vmatprep.subr.bf16.mxu1 %v3754_v36  ;;  %v1844_v40 = vpack.c.bf16 %v3546_v38, %v3545_v39  ;;  %v1983_v38 = vld [vmem:[%s4759_s9 + $0x90] sm:$0xff] }
 0x77c   : > { %v1991_v39 = vld [vmem:[%s4759_s9 + $0xd0] sm:$0xff] }
 0x77d   : > { %1913 = vmatmul.mubr.bf16.vlgmr.msra.gmra.mrb[20].mxu1 %v3650_v35 }
 0x77e   : > { %3152 = vmatpush3.bf16.msra.mxu1 %v1843_v37  ;;  %3155 = vmatprep.mubr.msk.bf16.mxu1 %vm3755_vm6, %v3754_v36 }
 0x77f   : > { %3153 = vmatprep.subr.bf16.mxu1 %v3754_v36 }
 0x781   : > { %v1854_v29 = vpop.permute.xlu0 %1853 }
 0x782   : > { %3154 = vmatpush3.bf16.msra.mxu1 %v1844_v40  ;;  %v1984_v40 = vld [vmem:[%s4759_s9 + $0x98] sm:$0xff] }
 0x783   : > { %2355 = vmatprep.subr.bf16.mxu1 %v3052_v46 }
 0x785   : > { %3156 = vmatmul.mubr.msk.bf16.vlgmr.msra.gmra.mrb[24].mxu1 %vm1876_vm7, %v3653_v41  ;;  %v1992_v41 = vld [vmem:[%s4759_s9 + $0xd8] sm:$0xff] }
 0x786   : > { %2387 = vmatprep.mubr.bf16.mxu1 %v3741_v8  ;;  %2356 = vmatpush1.bf16.msra.mxu1 %v3051_v45  ;;  %v3072_v45 = vcombine.high %v1983_v38, %v1991_v39  ;;  %v3074_v46 = vcombine.high %v1984_v40, %v1992_v41 }
 0x787   : > { %2357 = vmatprep.subr.bf16.mxu1 %v3068_v54  ;;  %v3073_v54 = vcombine.low %v1984_v40, %v1992_v41  ;;  %v1980_v40 = vld [vmem:[%s4759_s9 + $0x78] sm:$0xff] }
 0x789   : > { %v1859_v31 = vpop.permute.xlu1 %1858 }
 0x78a   : > { %2358 = vmatpush1.bf16.msra.mxu1 %v3067_v53  ;;  %v3071_v53 = vcombine.low %v1983_v38, %v1991_v39  ;;  %v1979_v38 = vld [vmem:[%s4759_s9 + $0x70] sm:$0xff]  ;;  %v1972_v39 = vld [vmem:[%s4759_s9 + $0x38] sm:$0xff] }
 0x78b   : > { %2359 = vmatprep.subr.bf16.mxu1 %v3084_v7  ;;  %v3103_v7 = vcombine.low %v2015_v51, %v2015_v51  ;;  %v3065_v51 = vcombine.low %v1972_v39, %v1980_v40 }
 0x78d   : > { %v2320_v55 = vand.u32 %v3103_v7, %v4430_v18  ;;  %v3081_v7 = vcombine.low %v1988_v48, %v1996_v49 }
 0x78e   : > { %2360 = vmatpush1.bf16.msra.mxu1 %v3083_v19  ;;  %v2323_v19 = vand.u32 %v3104_v59, %v4430_v18  ;;  %v2012_v59 = vld [vmem:[%s4759_s9 + $0x178] sm:$0xff] }
 0x78f   : > { %2361 = vmatprep.subr.bf16.mxu1 %v2311_v1  ;;  %v3062_v1 = vcombine.high %v1970_v22, %v1978_v23  ;;  %v3111_v23 = vcombine.low %v2019_v60, %v2019_v60 }
 0x792   : > { %2362 = vmatpush1.bf16.msra.mxu1 %v2308_v6  ;;  %v1993_v6 = vld [vmem:[%s4759_s9 + $0xe0] sm:$0xff] }
 0x793   : > { %2441 = vmatprep.subr.bf16.mxu1 %v3056_v14  ;;  %v3078_v14 = vcombine.high %v1986_v63, %v1994_v9 }
 0x850   : > { %v3142_v16 = vpop.f32.mrb[20].mxu1 }
 0x851   : > { %v3143_v20 = vpop.f32.mrb[21].mxu1 }
 0x852   : > { %v3144_v15 = vadd.f32 %v3143_v20, %v3142_v16  ;;  %v3145_v26 = vpop.f32.mrb[22].mxu1  ;;  %v2010_v16 = vld [vmem:[%s4759_s9 + $0x168] sm:$0xff]  ;;  %v2017_v20 = vld [vmem:[%s4759_s9 + $0x1a0] sm:$0x11] }
 0x853   : > { %v3146_v27 = vpop.f32.mrb[23].mxu1 }
 0x854   : > { %v3147_v28 = vadd.f32 %v3146_v27, %v3145_v26  ;;  %v1915_v30 = vadd.f32 %v3144_v15, %v1854_v29  ;;  %v2018_v15 = vld [vmem:[%s4759_s9 + $0x1a8] sm:$0x11]  ;;  %v3075_v26 = vcombine.low %v1985_v62, %v1993_v6  ;;  %v3077_v27 = vcombine.low %v1986_v63, %v1994_v9 }
 0x855   : > { %v3094_v29 = vcombine.high %v2002_v5, %v2010_v16  ;;  %v2700_v9 = vld [vmem:[%s4760_s10 + $0x8] sm:$0xff] }
 0x856   : > { %v1918_v17 = vadd.f32 %v3147_v28, %v1859_v31  ;;  %v3110_v31 = vcombine.high %v2018_v15, %v2018_v15 }
 0x858   : > { %v1955_v32 = vpop.f32.mrb[24].mxu1 }
 0x859   : > { %v1956_v33 = vadd.f32 %v1955_v32, %v1915_v30  ;;  %v3157_v34 = vpop.f32.mrb[25].mxu1  ;;  %v3108_v30 = vcombine.high %v2017_v20, %v2017_v20 }
 0x85a   : > { %v1958_v35 = vpop.f32.mrb[26].mxu1  ;;  %v3107_v34 = vcombine.low %v2017_v20, %v2017_v20 }
 0x85b   : > { %v1959_v36 = vadd.f32 %v1958_v35, %v1918_v17  ;;  %v3158_v37 = vpop.f32.mrb[27].mxu1  ;;  %v1962_v42 = vmax.f32 %v1956_v33, 0.0  ;;  %v3093_v33 = vcombine.low %v2002_v5, %v2010_v16  ;;  %v3109_v17 = vcombine.low %v2018_v15, %v2018_v15 }
 0x85c   : > { %v2335_v35 = vand.u32 %v3108_v30, %v4430_v18  ;;  %v1971_v37 = vld [vmem:[%s4759_s9 + $0x30] sm:$0xff]  ;;  %v2332_v41 = vand.u32 %v3107_v34, %v4430_v18 }
 0x85d   : > { %v1963_v43 = vmax.f32 %v1959_v36, 0.0  ;;  %v2341_v36 = vand.u32 %v3110_v31, %v4430_v18  ;;  %v3063_v50 = vcombine.low %v1971_v37, %v1979_v38 }
 0x85f   : > { %v4466_v44 = vpack.c.bf16 %v1963_v43, %v1962_v42  ;;  %v2338_v42 = vand.u32 %v3109_v17, %v4430_v18  ;;  %v3064_v43 = vcombine.high %v1971_v37, %v1979_v38 }
 0x861   : > { %3115 = vmatmul.mubr.msk.bf16.vlgmr.msra.gmra.mrb[28].mxu1 %vm2301_vm8, %v4466_v44  ;;  %3116 = vmatmul.mubr.msk.bf16.vlgmr.msra.gmra.mrb[8].mxu0 %vm2301_vm8, %v4466_v44 }
 0x862   : > { %2442 = vmatpush1.bf16.msra.mxu1 %v3055_v25  ;;  %2485 = vmatpush1.bf16.msra.mxu0 %v3057_v4  ;;  %v3076_v25 = vcombine.high %v1985_v62, %v1993_v6  ;;  %v2009_v4 = vld [vmem:[%s4759_s9 + $0x160] sm:$0xff]  ;;  %v2701_v6 = vld [vmem:[%s4760_s10 + $0x10] sm:$0xff] }
 0x863   : > { %2443 = vmatprep.subr.bf16.mxu1 %v3072_v45  ;;  %2486 = vmatprep.subr.bf16.mxu0 %v3074_v46  ;;  %v3092_v28 = vcombine.high %v2001_v12, %v2009_v4  ;;  %v3091_v32 = vcombine.low %v2001_v12, %v2009_v4  ;;  %v3066_v45 = vcombine.high %v1972_v39, %v1980_v40  ;;  %v1987_v46 = vld [vmem:[%s4759_s9 + $0xb0] sm:$0xff]  ;;  %v2716_v12 = vld [vmem:[%s4760_s10 + $0x88] sm:$0xff]  ;;  %v2718_v4 = vld [vmem:[%s4760_s10 + $0x98] sm:$0xff] }
 0x864   : > { %2473 = vmatprep.mubr.bf16.mxu1 %v3741_v8  ;;  %2516 = vmatprep.mubr.bf16.mxu0 %v3741_v8  ;;  %v3080_v52 = vcombine.high %v1987_v46, %v1995_v47 }
 0x866   : > { %2444 = vmatpush1.bf16.msra.mxu1 %v3071_v53  ;;  %2487 = vmatpush1.bf16.msra.mxu0 %v3073_v54  ;;  %v3082_v53 = vcombine.high %v1988_v48, %v1996_v49  ;;  %v2003_v54 = vld [vmem:[%s4759_s9 + $0x130] sm:$0xff] }
 0x867   : > { %2445 = vmatprep.subr.bf16.mxu1 %v3088_v56  ;;  %2488 = vmatprep.subr.bf16.mxu0 %v3090_v57  ;;  %v2011_v56 = vld [vmem:[%s4759_s9 + $0x170] sm:$0xff]  ;;  %v2004_v57 = vld [vmem:[%s4759_s9 + $0x138] sm:$0xff] }
 0x868   : > { %v3096_v13 = vcombine.high %v2003_v54, %v2011_v56  ;;  %v3095_v11 = vcombine.low %v2003_v54, %v2011_v56  ;;  %v3097_v22 = vcombine.low %v2004_v57, %v2012_v59  ;;  %v2875_v56 = vld [vmem:[%s4761_s11] sm:$0x1] }
 0x86a   : > { %2446 = vmatpush1.bf16.msra.mxu1 %v3087_v0  ;;  %2489 = vmatpush1.bf16.msra.mxu0 %v3089_v3  ;;  %v2020_v0 = vld [vmem:[%s4759_s9 + $0x1b8] sm:$0x11]  ;;  %v3079_v3 = vcombine.low %v1987_v46, %v1995_v47 }
 0x86b   : > { %2447 = vmatprep.subr.bf16.mxu1 %v2323_v19  ;;  %2490 = vmatprep.subr.bf16.mxu0 %v2329_v21  ;;  %v3098_v19 = vcombine.high %v2004_v57, %v2012_v59  ;;  %v3112_v21 = vcombine.high %v2019_v60, %v2019_v60  ;;  %v3114_v2 = vcombine.high %v2020_v0, %v2020_v0  ;;  %v2703_v57 = vld [vmem:[%s4760_s10 + $0x20] sm:$0xff]  ;;  %v2705_v59 = vld [vmem:[%s4760_s10 + $0x30] sm:$0xff] }
 0x86e   : > { %2448 = vmatpush1.bf16.msra.mxu1 %v2320_v55  ;;  %2491 = vmatpush1.bf16.msra.mxu0 %v2326_v61  ;;  %v3113_v55 = vcombine.low %v2020_v0, %v2020_v0  ;;  %v2347_v61 = vand.u32 %v3112_v21, %v4430_v18 }
 0x86f   : > { %2527 = vmatprep.subr.bf16.mxu1 %v3060_v58  ;;  %2570 = vmatprep.subr.bf16.mxu0 %v3062_v1  ;;  %v2353_v58 = vand.u32 %v3114_v2, %v4430_v18  ;;  %v2344_v1 = vand.u32 %v3111_v23, %v4430_v18  ;;  %v2706_v23 = vld [vmem:[%s4760_s10 + $0x38] sm:$0xff] }
 0x870   : > { %v2350_v62 = vand.u32 %v3113_v55, %v4430_v18  ;;  %v2720_v55 = vld [vmem:[%s4760_s10 + $0xa8] sm:$0xff] }
 0x871   : > { %3117 = vmatmul.mubr.msk.bf16.vlgmr.msra.gmra.mrb[32].mxu1 %vm2301_vm8, %v4466_v44  ;;  %3118 = vmatmul.mubr.msk.bf16.vlgmr.msra.gmra.mrb[12].mxu0 %vm2301_vm8, %v4466_v44 }
 0x872   : > { %2528 = vmatpush1.bf16.msra.mxu1 %v3059_v10  ;;  %2571 = vmatpush1.bf16.msra.mxu0 %v3061_v24  ;;  %v2715_v10 = vld [vmem:[%s4760_s10 + $0x80] sm:$0xff] }
 0x873   : > { %2529 = vmatprep.subr.bf16.mxu1 %v3076_v25  ;;  %2572 = vmatprep.subr.bf16.mxu0 %v3078_v14  ;;  %v2702_v14 = vld [vmem:[%s4760_s10 + $0x18] sm:$0xff] }
 0x874   : > { %2559 = vmatprep.mubr.bf16.mxu1 %v3741_v8  ;;  %2602 = vmatprep.mubr.bf16.mxu0 %v3741_v8 }
 0x876   : > { %2530 = vmatpush1.bf16.msra.mxu1 %v3075_v26  ;;  %2573 = vmatpush1.bf16.msra.mxu0 %v3077_v27 }
 0x877   : > { %2531 = vmatprep.subr.bf16.mxu1 %v3092_v28  ;;  %2574 = vmatprep.subr.bf16.mxu0 %v3094_v29 }
 0x87a   : > { %2532 = vmatpush1.bf16.msra.mxu1 %v3091_v32  ;;  %2575 = vmatpush1.bf16.msra.mxu0 %v3093_v33 }
 0x87b   : > { %2533 = vmatprep.subr.bf16.mxu1 %v2335_v35  ;;  %2576 = vmatprep.subr.bf16.mxu0 %v2341_v36 }
 0x87e   : > { %2534 = vmatpush1.bf16.msra.mxu1 %v2332_v41  ;;  %2577 = vmatpush1.bf16.msra.mxu0 %v2338_v42 }
 0x87f   : > { %2613 = vmatprep.subr.bf16.mxu1 %v3064_v43  ;;  %2656 = vmatprep.subr.bf16.mxu0 %v3066_v45 }
 0x881   : > { %3119 = vmatmul.mubr.msk.bf16.vlgmr.msra.gmra.mrb[36].mxu1 %vm2301_vm8, %v4466_v44  ;;  %3120 = vmatmul.mubr.msk.bf16.vlgmr.msra.gmra.mrb[16].mxu0 %vm2301_vm8, %v4466_v44 }
 0x882   : > { %2614 = vmatpush1.bf16.msra.mxu1 %v3063_v50  ;;  %2657 = vmatpush1.bf16.msra.mxu0 %v3065_v51 }
 0x883   : > { %2615 = vmatprep.subr.bf16.mxu1 %v3080_v52  ;;  %2658 = vmatprep.subr.bf16.mxu0 %v3082_v53 }
 0x884   : > { %2645 = vmatprep.mubr.bf16.mxu1 %v3741_v8  ;;  %2688 = vmatprep.mubr.bf16.mxu0 %v3741_v8  ;;  %v2699_v8 = vld [vmem:[%s4760_s10] sm:$0xff] }
 0x886   : > { %2616 = vmatpush1.bf16.msra.mxu1 %v3079_v3  ;;  %2659 = vmatpush1.bf16.msra.mxu0 %v3081_v7  ;;  %v2704_v7 = vld [vmem:[%s4760_s10 + $0x28] sm:$0xff] }
 0x887   : > { %2617 = vmatprep.subr.bf16.mxu1 %v3096_v13  ;;  %2660 = vmatprep.subr.bf16.mxu0 %v3098_v19  ;;  %v2719_v13 = vld [vmem:[%s4760_s10 + $0xa0] sm:$0xff]  ;;  %v2721_v19 = vld [vmem:[%s4760_s10 + $0xb0] sm:$0xff] }
 0x88a   : > { %2618 = vmatpush1.bf16.msra.mxu1 %v3095_v11  ;;  %2661 = vmatpush1.bf16.msra.mxu0 %v3097_v22 }
 0x88b   : > { %2619 = vmatprep.subr.bf16.mxu1 %v2347_v61  ;;  %2662 = vmatprep.subr.bf16.mxu0 %v2353_v58  ;;  %v2722_v61 = vld [vmem:[%s4760_s10 + $0xb8] sm:$0xff] }
 0x88e   : > { %2620 = vmatpush1.bf16.msra.mxu1 %v2344_v1  ;;  %2663 = vmatpush1.bf16.msra.mxu0 %v2350_v62 }
 0x891   : > { %3121 = vmatmul.mubr.msk.bf16.vlgmr.msra.gmra.mrb[40].mxu1 %vm2301_vm8, %v4466_v44  ;;  %3122 = vmatmul.mubr.msk.bf16.vlgmr.msra.gmra.mrb[20].mxu0 %vm2301_vm8, %v4466_v44  ;;  %v2717_v44 = vld [vmem:[%s4760_s10 + $0x90] sm:$0xff] }
 0x934   : > { %v2389_v63 = vpop.f32.mrb[28].mxu1  ;;  %v2432_v18 = vpop.f32.mrb[8].mxu0 }
 0x935   : > { %v2391_v24 = vpop.f32.mrb[29].mxu1  ;;  %v2434_v25 = vpop.f32.mrb[9].mxu0  ;;  %v2731_v20 = vmul.f32 %v2699_v8, %v2389_v63  ;;  %v2733_v15 = vmul.f32 %v2701_v6, %v2432_v18 }
 0x936   : > { %v2393_v5 = vpop.f32.mrb[30].mxu1  ;;  %v2436_v16 = vpop.f32.mrb[10].mxu0  ;;  %v2732_v30 = vmul.f32 %v2700_v9, %v2391_v24  ;;  %v2734_v31 = vmul.f32 %v2702_v14, %v2434_v25 }
 0x937   : > { %v2747_v26 = vmul.f32 %v2715_v10, %v2393_v5  ;;  %v2749_v27 = vmul.f32 %v2717_v44, %v2436_v16  ;;  %v2395_v28 = vpop.f32.mrb[31].mxu1  ;;  %v2438_v29 = vpop.f32.mrb[11].mxu0 }
 0x938   : > { %v2748_v32 = vmul.f32 %v2716_v12, %v2395_v28  ;;  %v2750_v33 = vmul.f32 %v2718_v4, %v2438_v29 }
 0x939   : > { %v2763_v34 = vadd.f32 %v2747_v26, %v2731_v20  ;;  %v2777_v17 = vadd.f32 %v2749_v27, %v2733_v15 }
 0x93a   : > { %v2770_v35 = vadd.f32 %v2748_v32, %v2732_v30  ;;  %v2784_v36 = vadd.f32 %v2750_v33, %v2734_v31 }
 0x93b   : > { %v2764_v37 = vrot.slane %v2763_v34, 4  ;;  %v2778_v38 = vrot.slane %v2777_v17, 4 }
 0x93c   : > { %v2771_v39 = vrot.slane %v2770_v35, 4  ;;  %v2785_v40 = vrot.slane %v2784_v36, 4 }
 0x93d   : > { %v2765_v41 = vadd.f32 %v2764_v37, %v2763_v34  ;;  %v2779_v42 = vadd.f32 %v2778_v38, %v2777_v17 }
 0x93e   : > { %v2772_v43 = vadd.f32 %v2771_v39, %v2770_v35  ;;  %v2786_v45 = vadd.f32 %v2785_v40, %v2784_v36 }
 0x93f   : > { %v2766_v46 = vrot.slane %v2765_v41, 2  ;;  %v2780_v47 = vrot.slane %v2779_v42, 2 }
 0x940   : > { %v2773_v48 = vrot.slane %v2772_v43, 2  ;;  %v2787_v49 = vrot.slane %v2786_v45, 2 }
 0x941   : > { %v2767_v50 = vadd.f32 %v2766_v46, %v2765_v41  ;;  %v2781_v51 = vadd.f32 %v2780_v47, %v2779_v42 }
 0x942   : > { %v2774_v52 = vadd.f32 %v2773_v48, %v2772_v43  ;;  %v2788_v53 = vadd.f32 %v2787_v49, %v2786_v45  ;;  %v2707_v48 = vld [vmem:[%s4760_s10 + $0x40] sm:$0xff]  ;;  %v2709_v49 = vld [vmem:[%s4760_s10 + $0x50] sm:$0xff] }
 0x943   : > { %v2768_v54 = vrot.slane %v2767_v50, 1  ;;  %v2782_v2 = vrot.slane %v2781_v51, 1 }
 0x944   : > { %v2775_v60 = vrot.slane %v2774_v52, 1  ;;  %v2475_v0 = vpop.f32.mrb[32].mxu1  ;;  %v2518_v3 = vpop.f32.mrb[12].mxu0  ;;  %v2789_v1 = vrot.slane %v2788_v53, 1 }
 0x945   : > { %v2769_v21 = vadd.f32 %v2768_v54, %v2767_v50  ;;  %v2477_v11 = vpop.f32.mrb[33].mxu1  ;;  %v2520_v22 = vpop.f32.mrb[13].mxu0  ;;  %v2735_v62 = vmul.f32 %v2703_v57, %v2475_v0  ;;  %v2737_v18 = vmul.f32 %v2705_v59, %v2518_v3  ;;  %v2783_v5 = vadd.f32 %v2782_v2, %v2781_v51  ;;  %v2723_v54 = vld [vmem:[%s4760_s10 + $0xc0] sm:$0xff]  ;;  %v2710_v3 = vld [vmem:[%s4760_s10 + $0x58] sm:$0xff] }
 0x946   : > { %v2776_v58 = vadd.f32 %v2775_v60, %v2774_v52  ;;  %v2479_v8 = vpop.f32.mrb[34].mxu1  ;;  %v2522_v6 = vpop.f32.mrb[14].mxu0  ;;  %v2736_v25 = vmul.f32 %v2704_v7, %v2477_v11  ;;  %v2738_v14 = vmul.f32 %v2706_v23, %v2520_v22  ;;  %v2790_v28 = vadd.f32 %v2789_v1, %v2788_v53  ;;  %v2708_v53 = vld [vmem:[%s4760_s10 + $0x48] sm:$0xff] }
 0x947   : > { %v2876_v63 = vadd.f32 %v2875_v56, %v2769_v21  ;;  %v2751_v9 = vmul.f32 %v2719_v13, %v2479_v8  ;;  %v2753_v10 = vmul.f32 %v2721_v19, %v2522_v6  ;;  %v2481_v44 = vpop.f32.mrb[35].mxu1  ;;  %v2524_v24 = vpop.f32.mrb[15].mxu0  ;;  %v2725_v56 = vld [vmem:[%s4760_s10 + $0xd0] sm:$0xff]  ;;  %v2724_v7 = vld [vmem:[%s4760_s10 + $0xc8] sm:$0xff]  ;;  %v2726_v13 = vld [vmem:[%s4760_s10 + $0xd8] sm:$0xff] }
 0x948   : > { %v2752_v12 = vmul.f32 %v2720_v55, %v2481_v44  ;;  %v2754_v4 = vmul.f32 %v2722_v61, %v2524_v24 }
 0x949   : > { %v2877_v16 = vadd.f32 %v2876_v63, %v2776_v58  ;;  %v2791_v20 = vadd.f32 %v2751_v9, %v2735_v62  ;;  %v2805_v15 = vadd.f32 %v2753_v10, %v2737_v18 }
 0x94a   : > { %v2798_v26 = vadd.f32 %v2752_v12, %v2736_v25  ;;  %v2812_v27 = vadd.f32 %v2754_v4, %v2738_v14 }
 0x94b   : > { %v2878_v29 = vadd.f32 %v2877_v16, %v2783_v5  ;;  %v2792_v30 = vrot.slane %v2791_v20, 4  ;;  %v2806_v31 = vrot.slane %v2805_v15, 4 }
 0x94c   : > { %v2799_v32 = vrot.slane %v2798_v26, 4  ;;  %v2813_v33 = vrot.slane %v2812_v27, 4 }
 0x94d   : > { %v2879_v34 = vadd.f32 %v2878_v29, %v2790_v28  ;;  %v2793_v17 = vadd.f32 %v2792_v30, %v2791_v20  ;;  %v2807_v35 = vadd.f32 %v2806_v31, %v2805_v15 }
 0x94e   : > { %v2800_v36 = vadd.f32 %v2799_v32, %v2798_v26  ;;  %v2814_v37 = vadd.f32 %v2813_v33, %v2812_v27 }
 0x94f   : > { %v2794_v38 = vrot.slane %v2793_v17, 2  ;;  %v2808_v39 = vrot.slane %v2807_v35, 2 }
 0x950   : > { %v2801_v40 = vrot.slane %v2800_v36, 2  ;;  %v2815_v41 = vrot.slane %v2814_v37, 2 }
 0x951   : > { %v2795_v42 = vadd.f32 %v2794_v38, %v2793_v17  ;;  %v2809_v43 = vadd.f32 %v2808_v39, %v2807_v35  ;;  %v2711_v39 = vld [vmem:[%s4760_s10 + $0x60] sm:$0xff] }
 0x952   : > { %v2802_v45 = vadd.f32 %v2801_v40, %v2800_v36  ;;  %v2816_v46 = vadd.f32 %v2815_v41, %v2814_v37  ;;  %v2713_v40 = vld [vmem:[%s4760_s10 + $0x70] sm:$0xff] }
 0x953   : > { %v2796_v47 = vrot.slane %v2795_v42, 1  ;;  %v2810_v59 = vrot.slane %v2809_v43, 1 }
 0x954   : > { %v2803_v50 = vrot.slane %v2802_v45, 1  ;;  %v2561_v51 = vpop.f32.mrb[36].mxu1  ;;  %v2604_v52 = vpop.f32.mrb[16].mxu0  ;;  %v2817_v21 = vrot.slane %v2816_v46, 1 }
 0x955   : > { %v2797_v57 = vadd.f32 %v2796_v47, %v2795_v42  ;;  %v2563_v60 = vpop.f32.mrb[37].mxu1  ;;  %v2606_v0 = vpop.f32.mrb[17].mxu0  ;;  %v2739_v2 = vmul.f32 %v2707_v48, %v2561_v51  ;;  %v2741_v55 = vmul.f32 %v2709_v49, %v2604_v52  ;;  %v2811_v9 = vadd.f32 %v2810_v59, %v2809_v43  ;;  %v2729_v47 = vld [vmem:[%s4760_s10 + $0xf0] sm:$0xff]  ;;  %v2714_v52 = vld [vmem:[%s4760_s10 + $0x78] sm:$0xff] }
 0x956   : > { %v2804_v19 = vadd.f32 %v2803_v50, %v2802_v45  ;;  %v2565_v11 = vpop.f32.mrb[38].mxu1  ;;  %v2608_v22 = vpop.f32.mrb[18].mxu0  ;;  %v2740_v8 = vmul.f32 %v2708_v53, %v2563_v60  ;;  %v2742_v6 = vmul.f32 %v2710_v3, %v2606_v0  ;;  %v2818_v12 = vadd.f32 %v2817_v21, %v2816_v46  ;;  %v2712_v45 = vld [vmem:[%s4760_s10 + $0x68] sm:$0xff]  ;;  %v2727_v46 = vld [vmem:[%s4760_s10 + $0xe0] sm:$0xff] }
 0x957   : > { %v2880_v23 = vadd.f32 %v2879_v34, %v2797_v57  ;;  %v2755_v61 = vmul.f32 %v2723_v54, %v2565_v11  ;;  %v2757_v58 = vmul.f32 %v2725_v56, %v2608_v22  ;;  %v2567_v1 = vpop.f32.mrb[39].mxu1  ;;  %v2610_v62 = vpop.f32.mrb[19].mxu0  ;;  %v2728_v53 = vld [vmem:[%s4760_s10 + $0xe8] sm:$0xff]  ;;  %v2730_v54 = vld [vmem:[%s4760_s10 + $0xf8] sm:$0xff] }
 0x958   : > { %v2756_v63 = vmul.f32 %v2724_v7, %v2567_v1  ;;  %v2758_v18 = vmul.f32 %v2726_v13, %v2610_v62 }
 0x959   : > { %v2881_v10 = vadd.f32 %v2880_v23, %v2804_v19  ;;  %v2819_v44 = vadd.f32 %v2755_v61, %v2739_v2  ;;  %v2833_v24 = vadd.f32 %v2757_v58, %v2741_v55 }
 0x95a   : > { %v2826_v25 = vadd.f32 %v2756_v63, %v2740_v8  ;;  %v2840_v14 = vadd.f32 %v2758_v18, %v2742_v6 }
 0x95b   : > { %v2882_v4 = vadd.f32 %v2881_v10, %v2811_v9  ;;  %v2820_v5 = vrot.slane %v2819_v44, 4  ;;  %v2834_v16 = vrot.slane %v2833_v24, 4 }
 0x95c   : > { %v2827_v20 = vrot.slane %v2826_v25, 4  ;;  %v2841_v15 = vrot.slane %v2840_v14, 4 }
 0x95d   : > { %v2883_v26 = vadd.f32 %v2882_v4, %v2818_v12  ;;  %v2821_v27 = vadd.f32 %v2820_v5, %v2819_v44  ;;  %v2835_v28 = vadd.f32 %v2834_v16, %v2833_v24 }
 0x95e   : > { %v2828_v29 = vadd.f32 %v2827_v20, %v2826_v25  ;;  %v2842_v30 = vadd.f32 %v2841_v15, %v2840_v14 }
 0x95f   : > { %v2822_v31 = vrot.slane %v2821_v27, 2  ;;  %v2836_v32 = vrot.slane %v2835_v28, 2 }
 0x960   : > { %v2829_v33 = vrot.slane %v2828_v29, 2  ;;  %v2843_v34 = vrot.slane %v2842_v30, 2 }
 0x961   : > { %v2823_v17 = vadd.f32 %v2822_v31, %v2821_v27  ;;  %v2837_v35 = vadd.f32 %v2836_v32, %v2835_v28 }
 0x962   : > { %v2830_v36 = vadd.f32 %v2829_v33, %v2828_v29  ;;  %v2844_v37 = vadd.f32 %v2843_v34, %v2842_v30 }
 0x963   : > { %v2824_v38 = vrot.slane %v2823_v17, 1  ;;  %v2838_v49 = vrot.slane %v2837_v35, 1 }
 0x964   : > { %v2831_v41 = vrot.slane %v2830_v36, 1  ;;  %v2647_v42 = vpop.f32.mrb[40].mxu1  ;;  %v2690_v43 = vpop.f32.mrb[20].mxu0  ;;  %v2845_v57 = vrot.slane %v2844_v37, 1 }
 0x965   : > { %v2825_v48 = vadd.f32 %v2824_v38, %v2823_v17  ;;  %v2649_v50 = vpop.f32.mrb[41].mxu1  ;;  %v2692_v51 = vpop.f32.mrb[21].mxu0  ;;  %v2743_v59 = vmul.f32 %v2711_v39, %v2647_v42  ;;  %v2745_v7 = vmul.f32 %v2713_v40, %v2690_v43  ;;  %v2839_v61 = vadd.f32 %v2838_v49, %v2837_v35 }
 0x966   : > { %v2832_v56 = vadd.f32 %v2831_v41, %v2830_v36  ;;  %v2651_v60 = vpop.f32.mrb[42].mxu1  ;;  %v2694_v0 = vpop.f32.mrb[22].mxu0  ;;  %v2744_v11 = vmul.f32 %v2712_v45, %v2649_v50  ;;  %v2746_v22 = vmul.f32 %v2714_v52, %v2692_v51  ;;  %v2846_v63 = vadd.f32 %v2845_v57, %v2844_v37 }
 0x967   : > { %v2884_v3 = vadd.f32 %v2883_v26, %v2825_v48  ;;  %v2759_v13 = vmul.f32 %v2727_v46, %v2651_v60  ;;  %v2761_v19 = vmul.f32 %v2729_v47, %v2694_v0  ;;  %v2653_v21 = vpop.f32.mrb[43].mxu1  ;;  %v2696_v2 = vpop.f32.mrb[23].mxu0 }
 0x968   : > { %v2760_v23 = vmul.f32 %v2728_v53, %v2653_v21  ;;  %v2762_v55 = vmul.f32 %v2730_v54, %v2696_v2 }
 0x969   : > { %v2885_v58 = vadd.f32 %v2884_v3, %v2832_v56  ;;  %v2847_v1 = vadd.f32 %v2759_v13, %v2743_v59  ;;  %v2861_v62 = vadd.f32 %v2761_v19, %v2745_v7 }
 0x96a   : > { %v2854_v8 = vadd.f32 %v2760_v23, %v2744_v11  ;;  %v2868_v6 = vadd.f32 %v2762_v55, %v2746_v22 }
 0x96b   : > { %v2886_v18 = vadd.f32 %v2885_v58, %v2839_v61  ;;  %v2848_v9 = vrot.slane %v2847_v1, 4  ;;  %v2862_v10 = vrot.slane %v2861_v62, 4 }
 0x96c   : > { %v2855_v44 = vrot.slane %v2854_v8, 4  ;;  %v2869_v24 = vrot.slane %v2868_v6, 4 }
 0x96d   : > { %v2887_v25 = vadd.f32 %v2886_v18, %v2846_v63  ;;  %v2849_v14 = vadd.f32 %v2848_v9, %v2847_v1  ;;  %v2863_v12 = vadd.f32 %v2862_v10, %v2861_v62 }
 0x96e   : > { %v2856_v4 = vadd.f32 %v2855_v44, %v2854_v8  ;;  %v2870_v5 = vadd.f32 %v2869_v24, %v2868_v6 }
 0x96f   : > { %v2850_v16 = vrot.slane %v2849_v14, 2  ;;  %v2864_v20 = vrot.slane %v2863_v12, 2 }
 0x970   : > { %v2857_v15 = vrot.slane %v2856_v4, 2  ;;  %v2871_v26 = vrot.slane %v2870_v5, 2 }
 0x971   : > { %v2851_v27 = vadd.f32 %v2850_v16, %v2849_v14  ;;  %v2865_v28 = vadd.f32 %v2864_v20, %v2863_v12 }
 0x972   : > { %v2858_v29 = vadd.f32 %v2857_v15, %v2856_v4  ;;  %v2872_v31 = vadd.f32 %v2871_v26, %v2870_v5 }
 0x973   : > { %v2852_v30 = vrot.slane %v2851_v27, 1  ;;  %v2866_v34 = vrot.slane %v2865_v28, 1 }
 0x974   : > { %v2859_v32 = vrot.slane %v2858_v29, 1  ;;  %v2873_v36 = vrot.slane %v2872_v31, 1 }
 0x975   : > { %v2853_v33 = vadd.f32 %v2852_v30, %v2851_v27  ;;  %v2867_v37 = vadd.f32 %v2866_v34, %v2865_v28 }
 0x976   : > { %v2860_v17 = vadd.f32 %v2859_v32, %v2858_v29  ;;  %v2874_v39 = vadd.f32 %v2873_v36, %v2872_v31 }
 0x977   : > { %v2888_v35 = vadd.f32 %v2887_v25, %v2853_v33 }
 0x979   : > { %v2889_v38 = vadd.f32 %v2888_v35, %v2860_v17 }
 0x97b   : > { %v2890_v40 = vadd.f32 %v2889_v38, %v2867_v37 }
 0x97d   : > { %v2891_v41 = vadd.f32 %v2890_v40, %v2874_v39 }
 0x97f   : > { %2892 = vst [vmem:[%s405_s18] sm:$0x1] %v2891_v41 }
 0x980   : > { %3683 = shalt.err (!%p3680_p3)
}
 0x981   : > { %s3684_s29 = scalar_lea.hbm %s4708_s16, 16  ;;  %s3688_s18 = scalar_lea.hbm %s4762_s12, 32 }
 0x982   : > { %p3685_p4 = scmp.ne.s32.totalorder %s4708_s16, %s3684_s29  ;;  %p3689_p9 = scmp.lt.u32.totalorder %s4708_s16, %s4762_s12 }
 0x983   : > { %p3690_p10 = scmp.lt.u32.totalorder %s3688_s18, %s3684_s29  ;;  %p3692_p12 = scmp.lt.u32.totalorder %s3684_s29, %s4708_s16 }
 0x984   : > { %p3686_p7 = pnand %p3685_p4, %p3860_p5 }
 0x985   : > { %p3691_p11 = por %p3690_p10, %p3689_p9 }
 0x986   : > { %p3687_p8 = pneg %p3686_p7 }
 0x987   : > { %p3693_p13 = por %p3692_p12, %p3691_p11 }
 0x989   : > { %p3694_p0 = pnand %p3693_p13, %p3687_p8 }
 0x98b   : > { %3697 = shalt.err (!%p3694_p0)
}
 0x98c   : > { %3164 = dma.vmem_to_hbm [thread:$0]  (%p3860_p5), %s4710_s1, 16, %s4708_s16, %s2894_s19  }
 0x98d PF: > { %p3170_p1 = scmp.ge.s32.totalorder %s3732_s24, 2  ;;  %s2918_s17 = sand.u32 1, %s3720_s21  }
 0x98e   : > { %s2919_s25 = scalar_lea.sflag [#allocation3], %s2918_s17 }
 0x98f   : > { %p3167_p2 = pnand %p3170_p1, %p3864_p6 }
 0x991   : > { %3715 = dma.done.wait (!%p3167_p2), %s2919_s25, 16  }
 0x992   : > { %3717 = vsyncadd (!%p3167_p2), %s2919_s25, 4294967280  ;;  %p22_p3 = scmp.ge.s32.totalorder %s3847_s27, 4   ;;  %s4789_s21 = smov %s3724_s22 }
 0x993   : > { %s4790_s22 = smov %s3728_s23  ;;  %s4791_s23 = smov %s3858_s30 }
 0x994   : > { %s4792_s24 = smov %s3847_s27  ;;  %24 = sbr.rel (!%p22_p3) target bundleno = 7 (0x7), region = 103 }
 0x99b   :  { %2923 = vsyncpa [#allocation3], 1 }
 0x99c   :  { %2925 = vsyncpa [#allocation3 + $0x1], 1 }

</bundles_post_ra>
